<compile_context>
chip_gen: v7x
topology: tpu7x:2x2x1
jax: 0.10.0
libtpu: 0.0.40
codegen_flags: <defaults>
</compile_context>

<pallas_src>
import functools

import jax
import jax.numpy as jnp
from jax.experimental import pallas as pl
from jax.experimental.pallas import tpu as pltpu

KS = 7                    # conv kernel size
PAD = (KS - 1) // 2       # 3


def _spatial_gate_kernel(w_ref, bn_ref, x_ref, wmask_ref, o_ref, pool_ref, *, W):
    # w_ref    : SMEM (2*7*7,) f32  conv weight flattened as [cin, kh, kw]
    # bn_ref   : SMEM (2,)     f32  folded BatchNorm (scale, shift)
    # x_ref    : VMEM (Nb, C, H*W)  input block, spatial dims flattened (lane-dense)
    # wmask_ref: VMEM (7, H*W) f32  per-kj column-validity masks (0/1)
    # o_ref    : VMEM (Nb, 1, H*W)
    # pool_ref : VMEM scratch (2, Nb, H*W + 2*HALO)  zero-haloed pooled maps
    Nb, C, HW = x_ref.shape
    HALO = (pool_ref.shape[2] - HW) // 2        # 128-aligned halo width

    # ---- ChannelPool: fused single pass over C (running max + running sum) ----
    x0 = x_ref[:, 0, :].astype(jnp.float32)
    c_max = x0
    c_sum = x0
    for c in range(1, C):                        # C is a trace-time constant
        xc = x_ref[:, c, :].astype(jnp.float32)
        c_max = jnp.maximum(c_max, xc)
        c_sum = c_sum + xc
    c_mean = c_sum * (1.0 / C)

    # ---- stage pooled maps into the padded scratch ----
    # Only the thin halo strips are (re)zeroed; the interior is fully
    # overwritten every step.  Halos are rewritten per step (not under
    # pl.when(program_id==0)) so the kernel stays correct when the batch axis
    # is sharded across TensorCores ("parallel" semantics).
    halo_zeros = jnp.zeros((2, Nb, HALO), jnp.float32)
    pool_ref[:, :, 0:HALO] = halo_zeros
    pool_ref[:, :, HALO + HW:HALO + HW + HALO] = halo_zeros
    pool_ref[0, :, HALO:HALO + HW] = c_max       # lane-aligned (HALO % 128 == 0)
    pool_ref[1, :, HALO:HALO + HW] = c_mean

    # ---- 7x7 conv (2 -> 1 channels), stride 1, zero padding 3, no bias ----
    # In the flattened layout a (ki, kj) tap is a shifted slice at offset
    # (ki-3)*W + (kj-3).  Row OOB lands in the zero halo; column OOB is killed
    # by the per-kj mask, which is shared across ci and ki (7 mask multiplies
    # total instead of 98 selects).
    acc = jnp.zeros((Nb, HW), jnp.float32)
    for kj in range(KS):
        dj = kj - PAD
        inner = jnp.zeros((Nb, HW), jnp.float32)
        for ci in range(2):
            for ki in range(KS):
                a = HALO + (ki - PAD) * W + dj
                wv = w_ref[ci * KS * KS + ki * KS + kj]
                inner = inner + wv * pool_ref[ci, :, a:a + HW]
        acc = acc + wmask_ref[kj:kj + 1, :] * inner

    # ---- BatchNorm2d folded to scale/shift (eval-mode init stats) + sigmoid ----
    y = acc * bn_ref[0] + bn_ref[1]
    o_ref[:, 0, :] = jax.nn.sigmoid(y).astype(o_ref.dtype)


def spatial_gate(x, conv_w, bn_gamma, bn_beta, eps=1e-5):
    """x: (N, C, H, W) float32; conv_w: (1, 2, 7, 7); bn_gamma/bn_beta: (1,)."""
    N, C, H, W = x.shape
    HW = H * W
    HALO = ((PAD * W + PAD + 127) // 128) * 128   # lane-aligned halo

    # Fold BatchNorm2d (running_mean=0, running_var=1 at init) into scale/shift.
    # TODO(synk): PyTorch BatchNorm2d in training mode would use batch statistics;
    # this matches eval-mode semantics with freshly initialized running stats.
    scale = (bn_gamma / jnp.sqrt(1.0 + eps)).astype(jnp.float32).reshape(1)
    shift = bn_beta.astype(jnp.float32).reshape(1)
    bn_params = jnp.concatenate([scale, shift])                    # (2,)
    w_flat = conv_w.reshape(-1).astype(jnp.float32)                # (98,)

    # Lane-dense layout: flatten spatial dims (free, contiguous reshape).
    x2 = x.reshape(N, C, HW)

    # Precomputed per-kj column-validity masks for the flattened conv.
    col = jnp.arange(HW, dtype=jnp.int32) % W
    wmask = jnp.stack(
        [((col + (kj - PAD) >= 0) & (col + (kj - PAD) < W)).astype(jnp.float32)
         for kj in range(KS)], axis=0)                             # (7, HW)

    # Batch block: biggest divisor of N (<= 8) whose double-buffered working
    # set stays well inside the default scoped-VMEM budget (safe on v5e too).
    # TODO(synk): for very large C*H*W (v7x 64 MiB VMEM) add a C- or H-tile grid
    # axis with running max/sum accumulators instead of a full-C block.
    budget = 12 * 1024 * 1024
    Nb = 1
    for cand in (8, 7, 6, 5, 4, 3, 2, 1):
        if N % cand != 0:
            continue
        need = 4 * (2 * cand * C * HW            # double-buffered input block
                    + 2 * cand * HW              # double-buffered output block
                    + 2 * KS * HW                # masks
                    + 2 * cand * (HW + 2 * HALO))  # pooled scratch
        if need <= budget:
            Nb = cand
            break

    kernel = functools.partial(_spatial_gate_kernel, W=W)

    grid_spec = pltpu.PrefetchScalarGridSpec(
        num_scalar_prefetch=0,
        grid=(N // Nb,),
        in_specs=[
            pl.BlockSpec(memory_space=pltpu.MemorySpace.SMEM),         # conv weights
            pl.BlockSpec(memory_space=pltpu.MemorySpace.SMEM),         # bn scale/shift
            pl.BlockSpec((Nb, C, HW), lambda n: (n, 0, 0)),            # x (lane-dense)
            pl.BlockSpec((KS, HW), lambda n: (0, 0)),                  # column masks
        ],
        out_specs=pl.BlockSpec((Nb, 1, HW), lambda n: (n, 0, 0)),
        scratch_shapes=[pltpu.VMEM((2, Nb, HW + 2 * HALO), jnp.float32)],
    )

    out = pl.pallas_call(
        kernel,
        out_shape=jax.ShapeDtypeStruct((N, 1, HW), jnp.float32),
        grid_spec=grid_spec,
        compiler_params=pltpu.CompilerParams(
            dimension_semantics=("parallel",)),
    )(w_flat, bn_params, x2, wmask)

    return out.reshape(N, 1, H, W)


def _reference(x, conv_w, bn_gamma, bn_beta, eps=1e-5):
    """Pure-JAX reference of SpatialGate.forward (eval-mode BN)."""
    c_max = jnp.max(x, axis=1, keepdims=True)
    c_mean = jnp.mean(x, axis=1, keepdims=True)
    comp = jnp.concatenate([c_max, c_mean], axis=1)                # (N, 2, H, W)
    conv = jax.lax.conv_general_dilated(
        comp, conv_w, window_strides=(1, 1), padding=[(PAD, PAD), (PAD, PAD)],
        dimension_numbers=("NCHW", "OIHW", "NCHW"))
    bn = conv * (bn_gamma / jnp.sqrt(1.0 + eps)).reshape(1, 1, 1, 1) + \
         bn_beta.reshape(1, 1, 1, 1)
    return jax.nn.sigmoid(bn)


if __name__ == "__main__":
    key = jax.random.PRNGKey(0)
    k_x, k_w, k_g = jax.random.split(key, 3)

    N, C, H, W = 2, 4, 16, 16
    x = jax.random.normal(k_x, (N, C, H, W), dtype=jnp.float32)

    # Deterministic parameter init matching the module's __init__ statistics:
    # conv weight ~ N(0, 0.02), bn gamma ~ N(0, 0.02), bn beta = 0.
    conv_w = 0.02 * jax.random.normal(k_w, (1, 2, KS, KS), dtype=jnp.float32)
    bn_gamma = 0.02 * jax.random.normal(k_g, (1,), dtype=jnp.float32)
    bn_beta = jnp.zeros((1,), dtype=jnp.float32)

    out = spatial_gate(x, conv_w, bn_gamma, bn_beta)
    out = jax.block_until_ready(out)

    ref = _reference(x, conv_w, bn_gamma, bn_beta)
    assert out.shape == (N, 1, H, W)
    assert jnp.allclose(out, ref, atol=1e-5, rtol=1e-5)

    print("KERNEL_OK")
</pallas_src>

<mosaic_0001>
module attributes {stable_mosaic.version = 11 : i64} {
  func.func @_spatial_gate_kernel(%arg0: i32, %arg1: memref<98xf32, #tpu.memory_space<smem>>, %arg2: memref<2xf32, #tpu.memory_space<smem>>, %arg3: memref<2x4x256xf32, #tpu.memory_space<vmem>>, %arg4: memref<7x256xf32, #tpu.memory_space<vmem>>, %arg5: memref<2x1x256xf32, #tpu.memory_space<vmem>>, %arg6: memref<2x2x512xf32, #tpu.memory_space<vmem>>) attributes {dimension_semantics = [#tpu.dimension_semantics<parallel>], iteration_bounds = array<i64: 1>, scalar_prefetch = 0 : i64, scratch_operands = 1 : i64, tpu.core_type = #tpu.core_type<tc>, window_params = [{transform_indices = @transform_0, window_bounds = array<i64: 98>}, {transform_indices = @transform_1, window_bounds = array<i64: 2>}, {transform_indices = @transform_2, window_bounds = array<i64: 2, 4, 256>}, {pipeline_mode = #tpu.pipeline_mode<synchronous>, transform_indices = @transform_3, window_bounds = array<i64: 7, 256>}, {transform_indices = @transform_4, window_bounds = array<i64: 2, 1, 256>}]} {
    %c0 = arith.constant 0 : index
    %c0_0 = arith.constant 0 : index
    %c0_1 = arith.constant 0 : index
    %0 = vector.load %arg3[%c0, %c0_0, %c0_1] : memref<2x4x256xf32, #tpu.memory_space<vmem>>, vector<2x1x256xf32>
    %1 = vector.shape_cast %0 : vector<2x1x256xf32> to vector<2x256xf32>
    %c0_2 = arith.constant 0 : index
    %c1 = arith.constant 1 : index
    %c0_3 = arith.constant 0 : index
    %2 = vector.load %arg3[%c0_2, %c1, %c0_3] : memref<2x4x256xf32, #tpu.memory_space<vmem>>, vector<2x1x256xf32>
    %3 = vector.shape_cast %2 : vector<2x1x256xf32> to vector<2x256xf32>
    %4 = arith.maximumf %1, %3 : vector<2x256xf32>
    %5 = arith.addf %1, %3 : vector<2x256xf32>
    %c0_4 = arith.constant 0 : index
    %c2 = arith.constant 2 : index
    %c0_5 = arith.constant 0 : index
    %6 = vector.load %arg3[%c0_4, %c2, %c0_5] : memref<2x4x256xf32, #tpu.memory_space<vmem>>, vector<2x1x256xf32>
    %7 = vector.shape_cast %6 : vector<2x1x256xf32> to vector<2x256xf32>
    %8 = arith.maximumf %4, %7 : vector<2x256xf32>
    %9 = arith.addf %5, %7 : vector<2x256xf32>
    %c0_6 = arith.constant 0 : index
    %c3 = arith.constant 3 : index
    %c0_7 = arith.constant 0 : index
    %10 = vector.load %arg3[%c0_6, %c3, %c0_7] : memref<2x4x256xf32, #tpu.memory_space<vmem>>, vector<2x1x256xf32>
    %11 = vector.shape_cast %10 : vector<2x1x256xf32> to vector<2x256xf32>
    %12 = arith.maximumf %8, %11 : vector<2x256xf32>
    %13 = arith.addf %9, %11 : vector<2x256xf32>
    %cst = arith.constant 2.500000e-01 : f32
    %14 = vector.broadcast %cst : f32 to vector<2x256xf32>
    %15 = arith.mulf %13, %14 : vector<2x256xf32>
    %cst_8 = arith.constant 0.000000e+00 : f32
    %16 = vector.broadcast %cst_8 : f32 to vector<2x2x128xf32>
    %c0_9 = arith.constant 0 : index
    %c0_10 = arith.constant 0 : index
    %c0_11 = arith.constant 0 : index
    %17 = vector.load %arg6[%c0_9, %c0_10, %c0_11] : memref<2x2x512xf32, #tpu.memory_space<vmem>>, vector<2x2x128xf32>
    tpu.vector_store %arg6[%c0_9, %c0_10, %c0_11], %16 {strides = array<i32>} : memref<2x2x512xf32, #tpu.memory_space<vmem>>, vector<2x2x128xf32>,
    %c0_12 = arith.constant 0 : index
    %c0_13 = arith.constant 0 : index
    %c384 = arith.constant 384 : index
    %18 = vector.load %arg6[%c0_12, %c0_13, %c384] : memref<2x2x512xf32, #tpu.memory_space<vmem>>, vector<2x2x128xf32>
    tpu.vector_store %arg6[%c0_12, %c0_13, %c384], %16 {strides = array<i32>} : memref<2x2x512xf32, #tpu.memory_space<vmem>>, vector<2x2x128xf32>,
    %c0_14 = arith.constant 0 : index
    %c0_15 = arith.constant 0 : index
    %c128 = arith.constant 128 : index
    %19 = vector.load %arg6[%c0_14, %c0_15, %c128] : memref<2x2x512xf32, #tpu.memory_space<vmem>>, vector<1x2x256xf32>
    %20 = vector.shape_cast %19 : vector<1x2x256xf32> to vector<2x256xf32>
    %21 = vector.shape_cast %12 : vector<2x256xf32> to vector<1x2x256xf32>
    tpu.vector_store %arg6[%c0_14, %c0_15, %c128], %21 {strides = array<i32>} : memref<2x2x512xf32, #tpu.memory_space<vmem>>, vector<1x2x256xf32>,
    %c1_16 = arith.constant 1 : index
    %c0_17 = arith.constant 0 : index
    %c128_18 = arith.constant 128 : index
    %22 = vector.load %arg6[%c1_16, %c0_17, %c128_18] : memref<2x2x512xf32, #tpu.memory_space<vmem>>, vector<1x2x256xf32>
    %23 = vector.shape_cast %22 : vector<1x2x256xf32> to vector<2x256xf32>
    %24 = vector.shape_cast %15 : vector<2x256xf32> to vector<1x2x256xf32>
    tpu.vector_store %arg6[%c1_16, %c0_17, %c128_18], %24 {strides = array<i32>} : memref<2x2x512xf32, #tpu.memory_space<vmem>>, vector<1x2x256xf32>,
    %cst_19 = arith.constant 0.000000e+00 : f32
    %25 = vector.broadcast %cst_19 : f32 to vector<2x256xf32>
    %cst_20 = arith.constant 0.000000e+00 : f32
    %26 = vector.broadcast %cst_20 : f32 to vector<2x256xf32>
    %c0_21 = arith.constant 0 : index
    %27 = memref.load %arg1[%c0_21] : memref<98xf32, #tpu.memory_space<smem>>
    %c0_22 = arith.constant 0 : index
    %c0_23 = arith.constant 0 : index
    %c77 = arith.constant 77 : index
    %28 = vector.load %arg6[%c0_22, %c0_23, %c77] : memref<2x2x512xf32, #tpu.memory_space<vmem>>, vector<1x2x256xf32>
    %29 = vector.shape_cast %28 : vector<1x2x256xf32> to vector<2x256xf32>
    %30 = vector.broadcast %27 : f32 to vector<2x256xf32>
    %31 = arith.mulf %30, %29 : vector<2x256xf32>
    %32 = arith.addf %26, %31 : vector<2x256xf32>
    %c7 = arith.constant 7 : index
    %33 = memref.load %arg1[%c7] : memref<98xf32, #tpu.memory_space<smem>>
    %c0_24 = arith.constant 0 : index
    %c0_25 = arith.constant 0 : index
    %c93 = arith.constant 93 : index
    %34 = vector.load %arg6[%c0_24, %c0_25, %c93] : memref<2x2x512xf32, #tpu.memory_space<vmem>>, vector<1x2x256xf32>
    %35 = vector.shape_cast %34 : vector<1x2x256xf32> to vector<2x256xf32>
    %36 = vector.broadcast %33 : f32 to vector<2x256xf32>
    %37 = arith.mulf %36, %35 : vector<2x256xf32>
    %38 = arith.addf %32, %37 : vector<2x256xf32>
    %c14 = arith.constant 14 : index
    %39 = memref.load %arg1[%c14] : memref<98xf32, #tpu.memory_space<smem>>
    %c0_26 = arith.constant 0 : index
    %c0_27 = arith.constant 0 : index
    %c109 = arith.constant 109 : index
    %40 = vector.load %arg6[%c0_26, %c0_27, %c109] : memref<2x2x512xf32, #tpu.memory_space<vmem>>, vector<1x2x256xf32>
    %41 = vector.shape_cast %40 : vector<1x2x256xf32> to vector<2x256xf32>
    %42 = vector.broadcast %39 : f32 to vector<2x256xf32>
    %43 = arith.mulf %42, %41 : vector<2x256xf32>
    %44 = arith.addf %38, %43 : vector<2x256xf32>
    %c21 = arith.constant 21 : index
    %45 = memref.load %arg1[%c21] : memref<98xf32, #tpu.memory_space<smem>>
    %c0_28 = arith.constant 0 : index
    %c0_29 = arith.constant 0 : index
    %c125 = arith.constant 125 : index
    %46 = vector.load %arg6[%c0_28, %c0_29, %c125] : memref<2x2x512xf32, #tpu.memory_space<vmem>>, vector<1x2x256xf32>
    %47 = vector.shape_cast %46 : vector<1x2x256xf32> to vector<2x256xf32>
    %48 = vector.broadcast %45 : f32 to vector<2x256xf32>
    %49 = arith.mulf %48, %47 : vector<2x256xf32>
    %50 = arith.addf %44, %49 : vector<2x256xf32>
    %c28 = arith.constant 28 : index
    %51 = memref.load %arg1[%c28] : memref<98xf32, #tpu.memory_space<smem>>
    %c0_30 = arith.constant 0 : index
    %c0_31 = arith.constant 0 : index
    %c141 = arith.constant 141 : index
    %52 = vector.load %arg6[%c0_30, %c0_31, %c141] : memref<2x2x512xf32, #tpu.memory_space<vmem>>, vector<1x2x256xf32>
    %53 = vector.shape_cast %52 : vector<1x2x256xf32> to vector<2x256xf32>
    %54 = vector.broadcast %51 : f32 to vector<2x256xf32>
    %55 = arith.mulf %54, %53 : vector<2x256xf32>
    %56 = arith.addf %50, %55 : vector<2x256xf32>
    %c35 = arith.constant 35 : index
    %57 = memref.load %arg1[%c35] : memref<98xf32, #tpu.memory_space<smem>>
    %c0_32 = arith.constant 0 : index
    %c0_33 = arith.constant 0 : index
    %c157 = arith.constant 157 : index
    %58 = vector.load %arg6[%c0_32, %c0_33, %c157] : memref<2x2x512xf32, #tpu.memory_space<vmem>>, vector<1x2x256xf32>
    %59 = vector.shape_cast %58 : vector<1x2x256xf32> to vector<2x256xf32>
    %60 = vector.broadcast %57 : f32 to vector<2x256xf32>
    %61 = arith.mulf %60, %59 : vector<2x256xf32>
    %62 = arith.addf %56, %61 : vector<2x256xf32>
    %c42 = arith.constant 42 : index
    %63 = memref.load %arg1[%c42] : memref<98xf32, #tpu.memory_space<smem>>
    %c0_34 = arith.constant 0 : index
    %c0_35 = arith.constant 0 : index
    %c173 = arith.constant 173 : index
    %64 = vector.load %arg6[%c0_34, %c0_35, %c173] : memref<2x2x512xf32, #tpu.memory_space<vmem>>, vector<1x2x256xf32>
    %65 = vector.shape_cast %64 : vector<1x2x256xf32> to vector<2x256xf32>
    %66 = vector.broadcast %63 : f32 to vector<2x256xf32>
    %67 = arith.mulf %66, %65 : vector<2x256xf32>
    %68 = arith.addf %62, %67 : vector<2x256xf32>
    %c49 = arith.constant 49 : index
    %69 = memref.load %arg1[%c49] : memref<98xf32, #tpu.memory_space<smem>>
    %c1_36 = arith.constant 1 : index
    %c0_37 = arith.constant 0 : index
    %c77_38 = arith.constant 77 : index
    %70 = vector.load %arg6[%c1_36, %c0_37, %c77_38] : memref<2x2x512xf32, #tpu.memory_space<vmem>>, vector<1x2x256xf32>
    %71 = vector.shape_cast %70 : vector<1x2x256xf32> to vector<2x256xf32>
    %72 = vector.broadcast %69 : f32 to vector<2x256xf32>
    %73 = arith.mulf %72, %71 : vector<2x256xf32>
    %74 = arith.addf %68, %73 : vector<2x256xf32>
    %c56 = arith.constant 56 : index
    %75 = memref.load %arg1[%c56] : memref<98xf32, #tpu.memory_space<smem>>
    %c1_39 = arith.constant 1 : index
    %c0_40 = arith.constant 0 : index
    %c93_41 = arith.constant 93 : index
    %76 = vector.load %arg6[%c1_39, %c0_40, %c93_41] : memref<2x2x512xf32, #tpu.memory_space<vmem>>, vector<1x2x256xf32>
    %77 = vector.shape_cast %76 : vector<1x2x256xf32> to vector<2x256xf32>
    %78 = vector.broadcast %75 : f32 to vector<2x256xf32>
    %79 = arith.mulf %78, %77 : vector<2x256xf32>
    %80 = arith.addf %74, %79 : vector<2x256xf32>
    %c63 = arith.constant 63 : index
    %81 = memref.load %arg1[%c63] : memref<98xf32, #tpu.memory_space<smem>>
    %c1_42 = arith.constant 1 : index
    %c0_43 = arith.constant 0 : index
    %c109_44 = arith.constant 109 : index
    %82 = vector.load %arg6[%c1_42, %c0_43, %c109_44] : memref<2x2x512xf32, #tpu.memory_space<vmem>>, vector<1x2x256xf32>
    %83 = vector.shape_cast %82 : vector<1x2x256xf32> to vector<2x256xf32>
    %84 = vector.broadcast %81 : f32 to vector<2x256xf32>
    %85 = arith.mulf %84, %83 : vector<2x256xf32>
    %86 = arith.addf %80, %85 : vector<2x256xf32>
    %c70 = arith.constant 70 : index
    %87 = memref.load %arg1[%c70] : memref<98xf32, #tpu.memory_space<smem>>
    %c1_45 = arith.constant 1 : index
    %c0_46 = arith.constant 0 : index
    %c125_47 = arith.constant 125 : index
    %88 = vector.load %arg6[%c1_45, %c0_46, %c125_47] : memref<2x2x512xf32, #tpu.memory_space<vmem>>, vector<1x2x256xf32>
    %89 = vector.shape_cast %88 : vector<1x2x256xf32> to vector<2x256xf32>
    %90 = vector.broadcast %87 : f32 to vector<2x256xf32>
    %91 = arith.mulf %90, %89 : vector<2x256xf32>
    %92 = arith.addf %86, %91 : vector<2x256xf32>
    %c77_48 = arith.constant 77 : index
    %93 = memref.load %arg1[%c77_48] : memref<98xf32, #tpu.memory_space<smem>>
    %c1_49 = arith.constant 1 : index
    %c0_50 = arith.constant 0 : index
    %c141_51 = arith.constant 141 : index
    %94 = vector.load %arg6[%c1_49, %c0_50, %c141_51] : memref<2x2x512xf32, #tpu.memory_space<vmem>>, vector<1x2x256xf32>
    %95 = vector.shape_cast %94 : vector<1x2x256xf32> to vector<2x256xf32>
    %96 = vector.broadcast %93 : f32 to vector<2x256xf32>
    %97 = arith.mulf %96, %95 : vector<2x256xf32>
    %98 = arith.addf %92, %97 : vector<2x256xf32>
    %c84 = arith.constant 84 : index
    %99 = memref.load %arg1[%c84] : memref<98xf32, #tpu.memory_space<smem>>
    %c1_52 = arith.constant 1 : index
    %c0_53 = arith.constant 0 : index
    %c157_54 = arith.constant 157 : index
    %100 = vector.load %arg6[%c1_52, %c0_53, %c157_54] : memref<2x2x512xf32, #tpu.memory_space<vmem>>, vector<1x2x256xf32>
    %101 = vector.shape_cast %100 : vector<1x2x256xf32> to vector<2x256xf32>
    %102 = vector.broadcast %99 : f32 to vector<2x256xf32>
    %103 = arith.mulf %102, %101 : vector<2x256xf32>
    %104 = arith.addf %98, %103 : vector<2x256xf32>
    %c91 = arith.constant 91 : index
    %105 = memref.load %arg1[%c91] : memref<98xf32, #tpu.memory_space<smem>>
    %c1_55 = arith.constant 1 : index
    %c0_56 = arith.constant 0 : index
    %c173_57 = arith.constant 173 : index
    %106 = vector.load %arg6[%c1_55, %c0_56, %c173_57] : memref<2x2x512xf32, #tpu.memory_space<vmem>>, vector<1x2x256xf32>
    %107 = vector.shape_cast %106 : vector<1x2x256xf32> to vector<2x256xf32>
    %108 = vector.broadcast %105 : f32 to vector<2x256xf32>
    %109 = arith.mulf %108, %107 : vector<2x256xf32>
    %110 = arith.addf %104, %109 : vector<2x256xf32>
    %c0_58 = arith.constant 0 : index
    %c0_59 = arith.constant 0 : index
    %111 = vector.load %arg4[%c0_58, %c0_59] : memref<7x256xf32, #tpu.memory_space<vmem>>, vector<1x256xf32>
    %112 = vector.broadcast %111 : vector<1x256xf32> to vector<2x256xf32>
    %113 = arith.mulf %112, %110 : vector<2x256xf32>
    %114 = arith.addf %25, %113 : vector<2x256xf32>
    %cst_60 = arith.constant 0.000000e+00 : f32
    %115 = vector.broadcast %cst_60 : f32 to vector<2x256xf32>
    %c1_61 = arith.constant 1 : index
    %116 = memref.load %arg1[%c1_61] : memref<98xf32, #tpu.memory_space<smem>>
    %c0_62 = arith.constant 0 : index
    %c0_63 = arith.constant 0 : index
    %c78 = arith.constant 78 : index
    %117 = vector.load %arg6[%c0_62, %c0_63, %c78] : memref<2x2x512xf32, #tpu.memory_space<vmem>>, vector<1x2x256xf32>
    %118 = vector.shape_cast %117 : vector<1x2x256xf32> to vector<2x256xf32>
    %119 = vector.broadcast %116 : f32 to vector<2x256xf32>
    %120 = arith.mulf %119, %118 : vector<2x256xf32>
    %121 = arith.addf %115, %120 : vector<2x256xf32>
    %c8 = arith.constant 8 : index
    %122 = memref.load %arg1[%c8] : memref<98xf32, #tpu.memory_space<smem>>
    %c0_64 = arith.constant 0 : index
    %c0_65 = arith.constant 0 : index
    %c94 = arith.constant 94 : index
    %123 = vector.load %arg6[%c0_64, %c0_65, %c94] : memref<2x2x512xf32, #tpu.memory_space<vmem>>, vector<1x2x256xf32>
    %124 = vector.shape_cast %123 : vector<1x2x256xf32> to vector<2x256xf32>
    %125 = vector.broadcast %122 : f32 to vector<2x256xf32>
    %126 = arith.mulf %125, %124 : vector<2x256xf32>
    %127 = arith.addf %121, %126 : vector<2x256xf32>
    %c15 = arith.constant 15 : index
    %128 = memref.load %arg1[%c15] : memref<98xf32, #tpu.memory_space<smem>>
    %c0_66 = arith.constant 0 : index
    %c0_67 = arith.constant 0 : index
    %c110 = arith.constant 110 : index
    %129 = vector.load %arg6[%c0_66, %c0_67, %c110] : memref<2x2x512xf32, #tpu.memory_space<vmem>>, vector<1x2x256xf32>
    %130 = vector.shape_cast %129 : vector<1x2x256xf32> to vector<2x256xf32>
    %131 = vector.broadcast %128 : f32 to vector<2x256xf32>
    %132 = arith.mulf %131, %130 : vector<2x256xf32>
    %133 = arith.addf %127, %132 : vector<2x256xf32>
    %c22 = arith.constant 22 : index
    %134 = memref.load %arg1[%c22] : memref<98xf32, #tpu.memory_space<smem>>
    %c0_68 = arith.constant 0 : index
    %c0_69 = arith.constant 0 : index
    %c126 = arith.constant 126 : index
    %135 = vector.load %arg6[%c0_68, %c0_69, %c126] : memref<2x2x512xf32, #tpu.memory_space<vmem>>, vector<1x2x256xf32>
    %136 = vector.shape_cast %135 : vector<1x2x256xf32> to vector<2x256xf32>
    %137 = vector.broadcast %134 : f32 to vector<2x256xf32>
    %138 = arith.mulf %137, %136 : vector<2x256xf32>
    %139 = arith.addf %133, %138 : vector<2x256xf32>
    %c29 = arith.constant 29 : index
    %140 = memref.load %arg1[%c29] : memref<98xf32, #tpu.memory_space<smem>>
    %c0_70 = arith.constant 0 : index
    %c0_71 = arith.constant 0 : index
    %c142 = arith.constant 142 : index
    %141 = vector.load %arg6[%c0_70, %c0_71, %c142] : memref<2x2x512xf32, #tpu.memory_space<vmem>>, vector<1x2x256xf32>
    %142 = vector.shape_cast %141 : vector<1x2x256xf32> to vector<2x256xf32>
    %143 = vector.broadcast %140 : f32 to vector<2x256xf32>
    %144 = arith.mulf %143, %142 : vector<2x256xf32>
    %145 = arith.addf %139, %144 : vector<2x256xf32>
    %c36 = arith.constant 36 : index
    %146 = memref.load %arg1[%c36] : memref<98xf32, #tpu.memory_space<smem>>
    %c0_72 = arith.constant 0 : index
    %c0_73 = arith.constant 0 : index
    %c158 = arith.constant 158 : index
    %147 = vector.load %arg6[%c0_72, %c0_73, %c158] : memref<2x2x512xf32, #tpu.memory_space<vmem>>, vector<1x2x256xf32>
    %148 = vector.shape_cast %147 : vector<1x2x256xf32> to vector<2x256xf32>
    %149 = vector.broadcast %146 : f32 to vector<2x256xf32>
    %150 = arith.mulf %149, %148 : vector<2x256xf32>
    %151 = arith.addf %145, %150 : vector<2x256xf32>
    %c43 = arith.constant 43 : index
    %152 = memref.load %arg1[%c43] : memref<98xf32, #tpu.memory_space<smem>>
    %c0_74 = arith.constant 0 : index
    %c0_75 = arith.constant 0 : index
    %c174 = arith.constant 174 : index
    %153 = vector.load %arg6[%c0_74, %c0_75, %c174] : memref<2x2x512xf32, #tpu.memory_space<vmem>>, vector<1x2x256xf32>
    %154 = vector.shape_cast %153 : vector<1x2x256xf32> to vector<2x256xf32>
    %155 = vector.broadcast %152 : f32 to vector<2x256xf32>
    %156 = arith.mulf %155, %154 : vector<2x256xf32>
    %157 = arith.addf %151, %156 : vector<2x256xf32>
    %c50 = arith.constant 50 : index
    %158 = memref.load %arg1[%c50] : memref<98xf32, #tpu.memory_space<smem>>
    %c1_76 = arith.constant 1 : index
    %c0_77 = arith.constant 0 : index
    %c78_78 = arith.constant 78 : index
    %159 = vector.load %arg6[%c1_76, %c0_77, %c78_78] : memref<2x2x512xf32, #tpu.memory_space<vmem>>, vector<1x2x256xf32>
    %160 = vector.shape_cast %159 : vector<1x2x256xf32> to vector<2x256xf32>
    %161 = vector.broadcast %158 : f32 to vector<2x256xf32>
    %162 = arith.mulf %161, %160 : vector<2x256xf32>
    %163 = arith.addf %157, %162 : vector<2x256xf32>
    %c57 = arith.constant 57 : index
    %164 = memref.load %arg1[%c57] : memref<98xf32, #tpu.memory_space<smem>>
    %c1_79 = arith.constant 1 : index
    %c0_80 = arith.constant 0 : index
    %c94_81 = arith.constant 94 : index
    %165 = vector.load %arg6[%c1_79, %c0_80, %c94_81] : memref<2x2x512xf32, #tpu.memory_space<vmem>>, vector<1x2x256xf32>
    %166 = vector.shape_cast %165 : vector<1x2x256xf32> to vector<2x256xf32>
    %167 = vector.broadcast %164 : f32 to vector<2x256xf32>
    %168 = arith.mulf %167, %166 : vector<2x256xf32>
    %169 = arith.addf %163, %168 : vector<2x256xf32>
    %c64 = arith.constant 64 : index
    %170 = memref.load %arg1[%c64] : memref<98xf32, #tpu.memory_space<smem>>
    %c1_82 = arith.constant 1 : index
    %c0_83 = arith.constant 0 : index
    %c110_84 = arith.constant 110 : index
    %171 = vector.load %arg6[%c1_82, %c0_83, %c110_84] : memref<2x2x512xf32, #tpu.memory_space<vmem>>, vector<1x2x256xf32>
    %172 = vector.shape_cast %171 : vector<1x2x256xf32> to vector<2x256xf32>
    %173 = vector.broadcast %170 : f32 to vector<2x256xf32>
    %174 = arith.mulf %173, %172 : vector<2x256xf32>
    %175 = arith.addf %169, %174 : vector<2x256xf32>
    %c71 = arith.constant 71 : index
    %176 = memref.load %arg1[%c71] : memref<98xf32, #tpu.memory_space<smem>>
    %c1_85 = arith.constant 1 : index
    %c0_86 = arith.constant 0 : index
    %c126_87 = arith.constant 126 : index
    %177 = vector.load %arg6[%c1_85, %c0_86, %c126_87] : memref<2x2x512xf32, #tpu.memory_space<vmem>>, vector<1x2x256xf32>
    %178 = vector.shape_cast %177 : vector<1x2x256xf32> to vector<2x256xf32>
    %179 = vector.broadcast %176 : f32 to vector<2x256xf32>
    %180 = arith.mulf %179, %178 : vector<2x256xf32>
    %181 = arith.addf %175, %180 : vector<2x256xf32>
    %c78_88 = arith.constant 78 : index
    %182 = memref.load %arg1[%c78_88] : memref<98xf32, #tpu.memory_space<smem>>
    %c1_89 = arith.constant 1 : index
    %c0_90 = arith.constant 0 : index
    %c142_91 = arith.constant 142 : index
    %183 = vector.load %arg6[%c1_89, %c0_90, %c142_91] : memref<2x2x512xf32, #tpu.memory_space<vmem>>, vector<1x2x256xf32>
    %184 = vector.shape_cast %183 : vector<1x2x256xf32> to vector<2x256xf32>
    %185 = vector.broadcast %182 : f32 to vector<2x256xf32>
    %186 = arith.mulf %185, %184 : vector<2x256xf32>
    %187 = arith.addf %181, %186 : vector<2x256xf32>
    %c85 = arith.constant 85 : index
    %188 = memref.load %arg1[%c85] : memref<98xf32, #tpu.memory_space<smem>>
    %c1_92 = arith.constant 1 : index
    %c0_93 = arith.constant 0 : index
    %c158_94 = arith.constant 158 : index
    %189 = vector.load %arg6[%c1_92, %c0_93, %c158_94] : memref<2x2x512xf32, #tpu.memory_space<vmem>>, vector<1x2x256xf32>
    %190 = vector.shape_cast %189 : vector<1x2x256xf32> to vector<2x256xf32>
    %191 = vector.broadcast %188 : f32 to vector<2x256xf32>
    %192 = arith.mulf %191, %190 : vector<2x256xf32>
    %193 = arith.addf %187, %192 : vector<2x256xf32>
    %c92 = arith.constant 92 : index
    %194 = memref.load %arg1[%c92] : memref<98xf32, #tpu.memory_space<smem>>
    %c1_95 = arith.constant 1 : index
    %c0_96 = arith.constant 0 : index
    %c174_97 = arith.constant 174 : index
    %195 = vector.load %arg6[%c1_95, %c0_96, %c174_97] : memref<2x2x512xf32, #tpu.memory_space<vmem>>, vector<1x2x256xf32>
    %196 = vector.shape_cast %195 : vector<1x2x256xf32> to vector<2x256xf32>
    %197 = vector.broadcast %194 : f32 to vector<2x256xf32>
    %198 = arith.mulf %197, %196 : vector<2x256xf32>
    %199 = arith.addf %193, %198 : vector<2x256xf32>
    %c1_98 = arith.constant 1 : index
    %c0_99 = arith.constant 0 : index
    %200 = vector.load %arg4[%c1_98, %c0_99] : memref<7x256xf32, #tpu.memory_space<vmem>>, vector<1x256xf32>
    %201 = vector.broadcast %200 : vector<1x256xf32> to vector<2x256xf32>
    %202 = arith.mulf %201, %199 : vector<2x256xf32>
    %203 = arith.addf %114, %202 : vector<2x256xf32>
    %cst_100 = arith.constant 0.000000e+00 : f32
    %204 = vector.broadcast %cst_100 : f32 to vector<2x256xf32>
    %c2_101 = arith.constant 2 : index
    %205 = memref.load %arg1[%c2_101] : memref<98xf32, #tpu.memory_space<smem>>
    %c0_102 = arith.constant 0 : index
    %c0_103 = arith.constant 0 : index
    %c79 = arith.constant 79 : index
    %206 = vector.load %arg6[%c0_102, %c0_103, %c79] : memref<2x2x512xf32, #tpu.memory_space<vmem>>, vector<1x2x256xf32>
    %207 = vector.shape_cast %206 : vector<1x2x256xf32> to vector<2x256xf32>
    %208 = vector.broadcast %205 : f32 to vector<2x256xf32>
    %209 = arith.mulf %208, %207 : vector<2x256xf32>
    %210 = arith.addf %204, %209 : vector<2x256xf32>
    %c9 = arith.constant 9 : index
    %211 = memref.load %arg1[%c9] : memref<98xf32, #tpu.memory_space<smem>>
    %c0_104 = arith.constant 0 : index
    %c0_105 = arith.constant 0 : index
    %c95 = arith.constant 95 : index
    %212 = vector.load %arg6[%c0_104, %c0_105, %c95] : memref<2x2x512xf32, #tpu.memory_space<vmem>>, vector<1x2x256xf32>
    %213 = vector.shape_cast %212 : vector<1x2x256xf32> to vector<2x256xf32>
    %214 = vector.broadcast %211 : f32 to vector<2x256xf32>
    %215 = arith.mulf %214, %213 : vector<2x256xf32>
    %216 = arith.addf %210, %215 : vector<2x256xf32>
    %c16 = arith.constant 16 : index
    %217 = memref.load %arg1[%c16] : memref<98xf32, #tpu.memory_space<smem>>
    %c0_106 = arith.constant 0 : index
    %c0_107 = arith.constant 0 : index
    %c111 = arith.constant 111 : index
    %218 = vector.load %arg6[%c0_106, %c0_107, %c111] : memref<2x2x512xf32, #tpu.memory_space<vmem>>, vector<1x2x256xf32>
    %219 = vector.shape_cast %218 : vector<1x2x256xf32> to vector<2x256xf32>
    %220 = vector.broadcast %217 : f32 to vector<2x256xf32>
    %221 = arith.mulf %220, %219 : vector<2x256xf32>
    %222 = arith.addf %216, %221 : vector<2x256xf32>
    %c23 = arith.constant 23 : index
    %223 = memref.load %arg1[%c23] : memref<98xf32, #tpu.memory_space<smem>>
    %c0_108 = arith.constant 0 : index
    %c0_109 = arith.constant 0 : index
    %c127 = arith.constant 127 : index
    %224 = vector.load %arg6[%c0_108, %c0_109, %c127] : memref<2x2x512xf32, #tpu.memory_space<vmem>>, vector<1x2x256xf32>
    %225 = vector.shape_cast %224 : vector<1x2x256xf32> to vector<2x256xf32>
    %226 = vector.broadcast %223 : f32 to vector<2x256xf32>
    %227 = arith.mulf %226, %225 : vector<2x256xf32>
    %228 = arith.addf %222, %227 : vector<2x256xf32>
    %c30 = arith.constant 30 : index
    %229 = memref.load %arg1[%c30] : memref<98xf32, #tpu.memory_space<smem>>
    %c0_110 = arith.constant 0 : index
    %c0_111 = arith.constant 0 : index
    %c143 = arith.constant 143 : index
    %230 = vector.load %arg6[%c0_110, %c0_111, %c143] : memref<2x2x512xf32, #tpu.memory_space<vmem>>, vector<1x2x256xf32>
    %231 = vector.shape_cast %230 : vector<1x2x256xf32> to vector<2x256xf32>
    %232 = vector.broadcast %229 : f32 to vector<2x256xf32>
    %233 = arith.mulf %232, %231 : vector<2x256xf32>
    %234 = arith.addf %228, %233 : vector<2x256xf32>
    %c37 = arith.constant 37 : index
    %235 = memref.load %arg1[%c37] : memref<98xf32, #tpu.memory_space<smem>>
    %c0_112 = arith.constant 0 : index
    %c0_113 = arith.constant 0 : index
    %c159 = arith.constant 159 : index
    %236 = vector.load %arg6[%c0_112, %c0_113, %c159] : memref<2x2x512xf32, #tpu.memory_space<vmem>>, vector<1x2x256xf32>
    %237 = vector.shape_cast %236 : vector<1x2x256xf32> to vector<2x256xf32>
    %238 = vector.broadcast %235 : f32 to vector<2x256xf32>
    %239 = arith.mulf %238, %237 : vector<2x256xf32>
    %240 = arith.addf %234, %239 : vector<2x256xf32>
    %c44 = arith.constant 44 : index
    %241 = memref.load %arg1[%c44] : memref<98xf32, #tpu.memory_space<smem>>
    %c0_114 = arith.constant 0 : index
    %c0_115 = arith.constant 0 : index
    %c175 = arith.constant 175 : index
    %242 = vector.load %arg6[%c0_114, %c0_115, %c175] : memref<2x2x512xf32, #tpu.memory_space<vmem>>, vector<1x2x256xf32>
    %243 = vector.shape_cast %242 : vector<1x2x256xf32> to vector<2x256xf32>
    %244 = vector.broadcast %241 : f32 to vector<2x256xf32>
    %245 = arith.mulf %244, %243 : vector<2x256xf32>
    %246 = arith.addf %240, %245 : vector<2x256xf32>
    %c51 = arith.constant 51 : index
    %247 = memref.load %arg1[%c51] : memref<98xf32, #tpu.memory_space<smem>>
    %c1_116 = arith.constant 1 : index
    %c0_117 = arith.constant 0 : index
    %c79_118 = arith.constant 79 : index
    %248 = vector.load %arg6[%c1_116, %c0_117, %c79_118] : memref<2x2x512xf32, #tpu.memory_space<vmem>>, vector<1x2x256xf32>
    %249 = vector.shape_cast %248 : vector<1x2x256xf32> to vector<2x256xf32>
    %250 = vector.broadcast %247 : f32 to vector<2x256xf32>
    %251 = arith.mulf %250, %249 : vector<2x256xf32>
    %252 = arith.addf %246, %251 : vector<2x256xf32>
    %c58 = arith.constant 58 : index
    %253 = memref.load %arg1[%c58] : memref<98xf32, #tpu.memory_space<smem>>
    %c1_119 = arith.constant 1 : index
    %c0_120 = arith.constant 0 : index
    %c95_121 = arith.constant 95 : index
    %254 = vector.load %arg6[%c1_119, %c0_120, %c95_121] : memref<2x2x512xf32, #tpu.memory_space<vmem>>, vector<1x2x256xf32>
    %255 = vector.shape_cast %254 : vector<1x2x256xf32> to vector<2x256xf32>
    %256 = vector.broadcast %253 : f32 to vector<2x256xf32>
    %257 = arith.mulf %256, %255 : vector<2x256xf32>
    %258 = arith.addf %252, %257 : vector<2x256xf32>
    %c65 = arith.constant 65 : index
    %259 = memref.load %arg1[%c65] : memref<98xf32, #tpu.memory_space<smem>>
    %c1_122 = arith.constant 1 : index
    %c0_123 = arith.constant 0 : index
    %c111_124 = arith.constant 111 : index
    %260 = vector.load %arg6[%c1_122, %c0_123, %c111_124] : memref<2x2x512xf32, #tpu.memory_space<vmem>>, vector<1x2x256xf32>
    %261 = vector.shape_cast %260 : vector<1x2x256xf32> to vector<2x256xf32>
    %262 = vector.broadcast %259 : f32 to vector<2x256xf32>
    %263 = arith.mulf %262, %261 : vector<2x256xf32>
    %264 = arith.addf %258, %263 : vector<2x256xf32>
    %c72 = arith.constant 72 : index
    %265 = memref.load %arg1[%c72] : memref<98xf32, #tpu.memory_space<smem>>
    %c1_125 = arith.constant 1 : index
    %c0_126 = arith.constant 0 : index
    %c127_127 = arith.constant 127 : index
    %266 = vector.load %arg6[%c1_125, %c0_126, %c127_127] : memref<2x2x512xf32, #tpu.memory_space<vmem>>, vector<1x2x256xf32>
    %267 = vector.shape_cast %266 : vector<1x2x256xf32> to vector<2x256xf32>
    %268 = vector.broadcast %265 : f32 to vector<2x256xf32>
    %269 = arith.mulf %268, %267 : vector<2x256xf32>
    %270 = arith.addf %264, %269 : vector<2x256xf32>
    %c79_128 = arith.constant 79 : index
    %271 = memref.load %arg1[%c79_128] : memref<98xf32, #tpu.memory_space<smem>>
    %c1_129 = arith.constant 1 : index
    %c0_130 = arith.constant 0 : index
    %c143_131 = arith.constant 143 : index
    %272 = vector.load %arg6[%c1_129, %c0_130, %c143_131] : memref<2x2x512xf32, #tpu.memory_space<vmem>>, vector<1x2x256xf32>
    %273 = vector.shape_cast %272 : vector<1x2x256xf32> to vector<2x256xf32>
    %274 = vector.broadcast %271 : f32 to vector<2x256xf32>
    %275 = arith.mulf %274, %273 : vector<2x256xf32>
    %276 = arith.addf %270, %275 : vector<2x256xf32>
    %c86 = arith.constant 86 : index
    %277 = memref.load %arg1[%c86] : memref<98xf32, #tpu.memory_space<smem>>
    %c1_132 = arith.constant 1 : index
    %c0_133 = arith.constant 0 : index
    %c159_134 = arith.constant 159 : index
    %278 = vector.load %arg6[%c1_132, %c0_133, %c159_134] : memref<2x2x512xf32, #tpu.memory_space<vmem>>, vector<1x2x256xf32>
    %279 = vector.shape_cast %278 : vector<1x2x256xf32> to vector<2x256xf32>
    %280 = vector.broadcast %277 : f32 to vector<2x256xf32>
    %281 = arith.mulf %280, %279 : vector<2x256xf32>
    %282 = arith.addf %276, %281 : vector<2x256xf32>
    %c93_135 = arith.constant 93 : index
    %283 = memref.load %arg1[%c93_135] : memref<98xf32, #tpu.memory_space<smem>>
    %c1_136 = arith.constant 1 : index
    %c0_137 = arith.constant 0 : index
    %c175_138 = arith.constant 175 : index
    %284 = vector.load %arg6[%c1_136, %c0_137, %c175_138] : memref<2x2x512xf32, #tpu.memory_space<vmem>>, vector<1x2x256xf32>
    %285 = vector.shape_cast %284 : vector<1x2x256xf32> to vector<2x256xf32>
    %286 = vector.broadcast %283 : f32 to vector<2x256xf32>
    %287 = arith.mulf %286, %285 : vector<2x256xf32>
    %288 = arith.addf %282, %287 : vector<2x256xf32>
    %c2_139 = arith.constant 2 : index
    %c0_140 = arith.constant 0 : index
    %289 = vector.load %arg4[%c2_139, %c0_140] : memref<7x256xf32, #tpu.memory_space<vmem>>, vector<1x256xf32>
    %290 = vector.broadcast %289 : vector<1x256xf32> to vector<2x256xf32>
    %291 = arith.mulf %290, %288 : vector<2x256xf32>
    %292 = arith.addf %203, %291 : vector<2x256xf32>
    %cst_141 = arith.constant 0.000000e+00 : f32
    %293 = vector.broadcast %cst_141 : f32 to vector<2x256xf32>
    %c3_142 = arith.constant 3 : index
    %294 = memref.load %arg1[%c3_142] : memref<98xf32, #tpu.memory_space<smem>>
    %c0_143 = arith.constant 0 : index
    %c0_144 = arith.constant 0 : index
    %c80 = arith.constant 80 : index
    %295 = vector.load %arg6[%c0_143, %c0_144, %c80] : memref<2x2x512xf32, #tpu.memory_space<vmem>>, vector<1x2x256xf32>
    %296 = vector.shape_cast %295 : vector<1x2x256xf32> to vector<2x256xf32>
    %297 = vector.broadcast %294 : f32 to vector<2x256xf32>
    %298 = arith.mulf %297, %296 : vector<2x256xf32>
    %299 = arith.addf %293, %298 : vector<2x256xf32>
    %c10 = arith.constant 10 : index
    %300 = memref.load %arg1[%c10] : memref<98xf32, #tpu.memory_space<smem>>
    %c0_145 = arith.constant 0 : index
    %c0_146 = arith.constant 0 : index
    %c96 = arith.constant 96 : index
    %301 = vector.load %arg6[%c0_145, %c0_146, %c96] : memref<2x2x512xf32, #tpu.memory_space<vmem>>, vector<1x2x256xf32>
    %302 = vector.shape_cast %301 : vector<1x2x256xf32> to vector<2x256xf32>
    %303 = vector.broadcast %300 : f32 to vector<2x256xf32>
    %304 = arith.mulf %303, %302 : vector<2x256xf32>
    %305 = arith.addf %299, %304 : vector<2x256xf32>
    %c17 = arith.constant 17 : index
    %306 = memref.load %arg1[%c17] : memref<98xf32, #tpu.memory_space<smem>>
    %c0_147 = arith.constant 0 : index
    %c0_148 = arith.constant 0 : index
    %c112 = arith.constant 112 : index
    %307 = vector.load %arg6[%c0_147, %c0_148, %c112] : memref<2x2x512xf32, #tpu.memory_space<vmem>>, vector<1x2x256xf32>
    %308 = vector.shape_cast %307 : vector<1x2x256xf32> to vector<2x256xf32>
    %309 = vector.broadcast %306 : f32 to vector<2x256xf32>
    %310 = arith.mulf %309, %308 : vector<2x256xf32>
    %311 = arith.addf %305, %310 : vector<2x256xf32>
    %c24 = arith.constant 24 : index
    %312 = memref.load %arg1[%c24] : memref<98xf32, #tpu.memory_space<smem>>
    %c0_149 = arith.constant 0 : index
    %c0_150 = arith.constant 0 : index
    %c128_151 = arith.constant 128 : index
    %313 = vector.load %arg6[%c0_149, %c0_150, %c128_151] : memref<2x2x512xf32, #tpu.memory_space<vmem>>, vector<1x2x256xf32>
    %314 = vector.shape_cast %313 : vector<1x2x256xf32> to vector<2x256xf32>
    %315 = vector.broadcast %312 : f32 to vector<2x256xf32>
    %316 = arith.mulf %315, %314 : vector<2x256xf32>
    %317 = arith.addf %311, %316 : vector<2x256xf32>
    %c31 = arith.constant 31 : index
    %318 = memref.load %arg1[%c31] : memref<98xf32, #tpu.memory_space<smem>>
    %c0_152 = arith.constant 0 : index
    %c0_153 = arith.constant 0 : index
    %c144 = arith.constant 144 : index
    %319 = vector.load %arg6[%c0_152, %c0_153, %c144] : memref<2x2x512xf32, #tpu.memory_space<vmem>>, vector<1x2x256xf32>
    %320 = vector.shape_cast %319 : vector<1x2x256xf32> to vector<2x256xf32>
    %321 = vector.broadcast %318 : f32 to vector<2x256xf32>
    %322 = arith.mulf %321, %320 : vector<2x256xf32>
    %323 = arith.addf %317, %322 : vector<2x256xf32>
    %c38 = arith.constant 38 : index
    %324 = memref.load %arg1[%c38] : memref<98xf32, #tpu.memory_space<smem>>
    %c0_154 = arith.constant 0 : index
    %c0_155 = arith.constant 0 : index
    %c160 = arith.constant 160 : index
    %325 = vector.load %arg6[%c0_154, %c0_155, %c160] : memref<2x2x512xf32, #tpu.memory_space<vmem>>, vector<1x2x256xf32>
    %326 = vector.shape_cast %325 : vector<1x2x256xf32> to vector<2x256xf32>
    %327 = vector.broadcast %324 : f32 to vector<2x256xf32>
    %328 = arith.mulf %327, %326 : vector<2x256xf32>
    %329 = arith.addf %323, %328 : vector<2x256xf32>
    %c45 = arith.constant 45 : index
    %330 = memref.load %arg1[%c45] : memref<98xf32, #tpu.memory_space<smem>>
    %c0_156 = arith.constant 0 : index
    %c0_157 = arith.constant 0 : index
    %c176 = arith.constant 176 : index
    %331 = vector.load %arg6[%c0_156, %c0_157, %c176] : memref<2x2x512xf32, #tpu.memory_space<vmem>>, vector<1x2x256xf32>
    %332 = vector.shape_cast %331 : vector<1x2x256xf32> to vector<2x256xf32>
    %333 = vector.broadcast %330 : f32 to vector<2x256xf32>
    %334 = arith.mulf %333, %332 : vector<2x256xf32>
    %335 = arith.addf %329, %334 : vector<2x256xf32>
    %c52 = arith.constant 52 : index
    %336 = memref.load %arg1[%c52] : memref<98xf32, #tpu.memory_space<smem>>
    %c1_158 = arith.constant 1 : index
    %c0_159 = arith.constant 0 : index
    %c80_160 = arith.constant 80 : index
    %337 = vector.load %arg6[%c1_158, %c0_159, %c80_160] : memref<2x2x512xf32, #tpu.memory_space<vmem>>, vector<1x2x256xf32>
    %338 = vector.shape_cast %337 : vector<1x2x256xf32> to vector<2x256xf32>
    %339 = vector.broadcast %336 : f32 to vector<2x256xf32>
    %340 = arith.mulf %339, %338 : vector<2x256xf32>
    %341 = arith.addf %335, %340 : vector<2x256xf32>
    %c59 = arith.constant 59 : index
    %342 = memref.load %arg1[%c59] : memref<98xf32, #tpu.memory_space<smem>>
    %c1_161 = arith.constant 1 : index
    %c0_162 = arith.constant 0 : index
    %c96_163 = arith.constant 96 : index
    %343 = vector.load %arg6[%c1_161, %c0_162, %c96_163] : memref<2x2x512xf32, #tpu.memory_space<vmem>>, vector<1x2x256xf32>
    %344 = vector.shape_cast %343 : vector<1x2x256xf32> to vector<2x256xf32>
    %345 = vector.broadcast %342 : f32 to vector<2x256xf32>
    %346 = arith.mulf %345, %344 : vector<2x256xf32>
    %347 = arith.addf %341, %346 : vector<2x256xf32>
    %c66 = arith.constant 66 : index
    %348 = memref.load %arg1[%c66] : memref<98xf32, #tpu.memory_space<smem>>
    %c1_164 = arith.constant 1 : index
    %c0_165 = arith.constant 0 : index
    %c112_166 = arith.constant 112 : index
    %349 = vector.load %arg6[%c1_164, %c0_165, %c112_166] : memref<2x2x512xf32, #tpu.memory_space<vmem>>, vector<1x2x256xf32>
    %350 = vector.shape_cast %349 : vector<1x2x256xf32> to vector<2x256xf32>
    %351 = vector.broadcast %348 : f32 to vector<2x256xf32>
    %352 = arith.mulf %351, %350 : vector<2x256xf32>
    %353 = arith.addf %347, %352 : vector<2x256xf32>
    %c73 = arith.constant 73 : index
    %354 = memref.load %arg1[%c73] : memref<98xf32, #tpu.memory_space<smem>>
    %c1_167 = arith.constant 1 : index
    %c0_168 = arith.constant 0 : index
    %c128_169 = arith.constant 128 : index
    %355 = vector.load %arg6[%c1_167, %c0_168, %c128_169] : memref<2x2x512xf32, #tpu.memory_space<vmem>>, vector<1x2x256xf32>
    %356 = vector.shape_cast %355 : vector<1x2x256xf32> to vector<2x256xf32>
    %357 = vector.broadcast %354 : f32 to vector<2x256xf32>
    %358 = arith.mulf %357, %356 : vector<2x256xf32>
    %359 = arith.addf %353, %358 : vector<2x256xf32>
    %c80_170 = arith.constant 80 : index
    %360 = memref.load %arg1[%c80_170] : memref<98xf32, #tpu.memory_space<smem>>
    %c1_171 = arith.constant 1 : index
    %c0_172 = arith.constant 0 : index
    %c144_173 = arith.constant 144 : index
    %361 = vector.load %arg6[%c1_171, %c0_172, %c144_173] : memref<2x2x512xf32, #tpu.memory_space<vmem>>, vector<1x2x256xf32>
    %362 = vector.shape_cast %361 : vector<1x2x256xf32> to vector<2x256xf32>
    %363 = vector.broadcast %360 : f32 to vector<2x256xf32>
    %364 = arith.mulf %363, %362 : vector<2x256xf32>
    %365 = arith.addf %359, %364 : vector<2x256xf32>
    %c87 = arith.constant 87 : index
    %366 = memref.load %arg1[%c87] : memref<98xf32, #tpu.memory_space<smem>>
    %c1_174 = arith.constant 1 : index
    %c0_175 = arith.constant 0 : index
    %c160_176 = arith.constant 160 : index
    %367 = vector.load %arg6[%c1_174, %c0_175, %c160_176] : memref<2x2x512xf32, #tpu.memory_space<vmem>>, vector<1x2x256xf32>
    %368 = vector.shape_cast %367 : vector<1x2x256xf32> to vector<2x256xf32>
    %369 = vector.broadcast %366 : f32 to vector<2x256xf32>
    %370 = arith.mulf %369, %368 : vector<2x256xf32>
    %371 = arith.addf %365, %370 : vector<2x256xf32>
    %c94_177 = arith.constant 94 : index
    %372 = memref.load %arg1[%c94_177] : memref<98xf32, #tpu.memory_space<smem>>
    %c1_178 = arith.constant 1 : index
    %c0_179 = arith.constant 0 : index
    %c176_180 = arith.constant 176 : index
    %373 = vector.load %arg6[%c1_178, %c0_179, %c176_180] : memref<2x2x512xf32, #tpu.memory_space<vmem>>, vector<1x2x256xf32>
    %374 = vector.shape_cast %373 : vector<1x2x256xf32> to vector<2x256xf32>
    %375 = vector.broadcast %372 : f32 to vector<2x256xf32>
    %376 = arith.mulf %375, %374 : vector<2x256xf32>
    %377 = arith.addf %371, %376 : vector<2x256xf32>
    %c3_181 = arith.constant 3 : index
    %c0_182 = arith.constant 0 : index
    %378 = vector.load %arg4[%c3_181, %c0_182] : memref<7x256xf32, #tpu.memory_space<vmem>>, vector<1x256xf32>
    %379 = vector.broadcast %378 : vector<1x256xf32> to vector<2x256xf32>
    %380 = arith.mulf %379, %377 : vector<2x256xf32>
    %381 = arith.addf %292, %380 : vector<2x256xf32>
    %cst_183 = arith.constant 0.000000e+00 : f32
    %382 = vector.broadcast %cst_183 : f32 to vector<2x256xf32>
    %c4 = arith.constant 4 : index
    %383 = memref.load %arg1[%c4] : memref<98xf32, #tpu.memory_space<smem>>
    %c0_184 = arith.constant 0 : index
    %c0_185 = arith.constant 0 : index
    %c81 = arith.constant 81 : index
    %384 = vector.load %arg6[%c0_184, %c0_185, %c81] : memref<2x2x512xf32, #tpu.memory_space<vmem>>, vector<1x2x256xf32>
    %385 = vector.shape_cast %384 : vector<1x2x256xf32> to vector<2x256xf32>
    %386 = vector.broadcast %383 : f32 to vector<2x256xf32>
    %387 = arith.mulf %386, %385 : vector<2x256xf32>
    %388 = arith.addf %382, %387 : vector<2x256xf32>
    %c11 = arith.constant 11 : index
    %389 = memref.load %arg1[%c11] : memref<98xf32, #tpu.memory_space<smem>>
    %c0_186 = arith.constant 0 : index
    %c0_187 = arith.constant 0 : index
    %c97 = arith.constant 97 : index
    %390 = vector.load %arg6[%c0_186, %c0_187, %c97] : memref<2x2x512xf32, #tpu.memory_space<vmem>>, vector<1x2x256xf32>
    %391 = vector.shape_cast %390 : vector<1x2x256xf32> to vector<2x256xf32>
    %392 = vector.broadcast %389 : f32 to vector<2x256xf32>
    %393 = arith.mulf %392, %391 : vector<2x256xf32>
    %394 = arith.addf %388, %393 : vector<2x256xf32>
    %c18 = arith.constant 18 : index
    %395 = memref.load %arg1[%c18] : memref<98xf32, #tpu.memory_space<smem>>
    %c0_188 = arith.constant 0 : index
    %c0_189 = arith.constant 0 : index
    %c113 = arith.constant 113 : index
    %396 = vector.load %arg6[%c0_188, %c0_189, %c113] : memref<2x2x512xf32, #tpu.memory_space<vmem>>, vector<1x2x256xf32>
    %397 = vector.shape_cast %396 : vector<1x2x256xf32> to vector<2x256xf32>
    %398 = vector.broadcast %395 : f32 to vector<2x256xf32>
    %399 = arith.mulf %398, %397 : vector<2x256xf32>
    %400 = arith.addf %394, %399 : vector<2x256xf32>
    %c25 = arith.constant 25 : index
    %401 = memref.load %arg1[%c25] : memref<98xf32, #tpu.memory_space<smem>>
    %c0_190 = arith.constant 0 : index
    %c0_191 = arith.constant 0 : index
    %c129 = arith.constant 129 : index
    %402 = vector.load %arg6[%c0_190, %c0_191, %c129] : memref<2x2x512xf32, #tpu.memory_space<vmem>>, vector<1x2x256xf32>
    %403 = vector.shape_cast %402 : vector<1x2x256xf32> to vector<2x256xf32>
    %404 = vector.broadcast %401 : f32 to vector<2x256xf32>
    %405 = arith.mulf %404, %403 : vector<2x256xf32>
    %406 = arith.addf %400, %405 : vector<2x256xf32>
    %c32 = arith.constant 32 : index
    %407 = memref.load %arg1[%c32] : memref<98xf32, #tpu.memory_space<smem>>
    %c0_192 = arith.constant 0 : index
    %c0_193 = arith.constant 0 : index
    %c145 = arith.constant 145 : index
    %408 = vector.load %arg6[%c0_192, %c0_193, %c145] : memref<2x2x512xf32, #tpu.memory_space<vmem>>, vector<1x2x256xf32>
    %409 = vector.shape_cast %408 : vector<1x2x256xf32> to vector<2x256xf32>
    %410 = vector.broadcast %407 : f32 to vector<2x256xf32>
    %411 = arith.mulf %410, %409 : vector<2x256xf32>
    %412 = arith.addf %406, %411 : vector<2x256xf32>
    %c39 = arith.constant 39 : index
    %413 = memref.load %arg1[%c39] : memref<98xf32, #tpu.memory_space<smem>>
    %c0_194 = arith.constant 0 : index
    %c0_195 = arith.constant 0 : index
    %c161 = arith.constant 161 : index
    %414 = vector.load %arg6[%c0_194, %c0_195, %c161] : memref<2x2x512xf32, #tpu.memory_space<vmem>>, vector<1x2x256xf32>
    %415 = vector.shape_cast %414 : vector<1x2x256xf32> to vector<2x256xf32>
    %416 = vector.broadcast %413 : f32 to vector<2x256xf32>
    %417 = arith.mulf %416, %415 : vector<2x256xf32>
    %418 = arith.addf %412, %417 : vector<2x256xf32>
    %c46 = arith.constant 46 : index
    %419 = memref.load %arg1[%c46] : memref<98xf32, #tpu.memory_space<smem>>
    %c0_196 = arith.constant 0 : index
    %c0_197 = arith.constant 0 : index
    %c177 = arith.constant 177 : index
    %420 = vector.load %arg6[%c0_196, %c0_197, %c177] : memref<2x2x512xf32, #tpu.memory_space<vmem>>, vector<1x2x256xf32>
    %421 = vector.shape_cast %420 : vector<1x2x256xf32> to vector<2x256xf32>
    %422 = vector.broadcast %419 : f32 to vector<2x256xf32>
    %423 = arith.mulf %422, %421 : vector<2x256xf32>
    %424 = arith.addf %418, %423 : vector<2x256xf32>
    %c53 = arith.constant 53 : index
    %425 = memref.load %arg1[%c53] : memref<98xf32, #tpu.memory_space<smem>>
    %c1_198 = arith.constant 1 : index
    %c0_199 = arith.constant 0 : index
    %c81_200 = arith.constant 81 : index
    %426 = vector.load %arg6[%c1_198, %c0_199, %c81_200] : memref<2x2x512xf32, #tpu.memory_space<vmem>>, vector<1x2x256xf32>
    %427 = vector.shape_cast %426 : vector<1x2x256xf32> to vector<2x256xf32>
    %428 = vector.broadcast %425 : f32 to vector<2x256xf32>
    %429 = arith.mulf %428, %427 : vector<2x256xf32>
    %430 = arith.addf %424, %429 : vector<2x256xf32>
    %c60 = arith.constant 60 : index
    %431 = memref.load %arg1[%c60] : memref<98xf32, #tpu.memory_space<smem>>
    %c1_201 = arith.constant 1 : index
    %c0_202 = arith.constant 0 : index
    %c97_203 = arith.constant 97 : index
    %432 = vector.load %arg6[%c1_201, %c0_202, %c97_203] : memref<2x2x512xf32, #tpu.memory_space<vmem>>, vector<1x2x256xf32>
    %433 = vector.shape_cast %432 : vector<1x2x256xf32> to vector<2x256xf32>
    %434 = vector.broadcast %431 : f32 to vector<2x256xf32>
    %435 = arith.mulf %434, %433 : vector<2x256xf32>
    %436 = arith.addf %430, %435 : vector<2x256xf32>
    %c67 = arith.constant 67 : index
    %437 = memref.load %arg1[%c67] : memref<98xf32, #tpu.memory_space<smem>>
    %c1_204 = arith.constant 1 : index
    %c0_205 = arith.constant 0 : index
    %c113_206 = arith.constant 113 : index
    %438 = vector.load %arg6[%c1_204, %c0_205, %c113_206] : memref<2x2x512xf32, #tpu.memory_space<vmem>>, vector<1x2x256xf32>
    %439 = vector.shape_cast %438 : vector<1x2x256xf32> to vector<2x256xf32>
    %440 = vector.broadcast %437 : f32 to vector<2x256xf32>
    %441 = arith.mulf %440, %439 : vector<2x256xf32>
    %442 = arith.addf %436, %441 : vector<2x256xf32>
    %c74 = arith.constant 74 : index
    %443 = memref.load %arg1[%c74] : memref<98xf32, #tpu.memory_space<smem>>
    %c1_207 = arith.constant 1 : index
    %c0_208 = arith.constant 0 : index
    %c129_209 = arith.constant 129 : index
    %444 = vector.load %arg6[%c1_207, %c0_208, %c129_209] : memref<2x2x512xf32, #tpu.memory_space<vmem>>, vector<1x2x256xf32>
    %445 = vector.shape_cast %444 : vector<1x2x256xf32> to vector<2x256xf32>
    %446 = vector.broadcast %443 : f32 to vector<2x256xf32>
    %447 = arith.mulf %446, %445 : vector<2x256xf32>
    %448 = arith.addf %442, %447 : vector<2x256xf32>
    %c81_210 = arith.constant 81 : index
    %449 = memref.load %arg1[%c81_210] : memref<98xf32, #tpu.memory_space<smem>>
    %c1_211 = arith.constant 1 : index
    %c0_212 = arith.constant 0 : index
    %c145_213 = arith.constant 145 : index
    %450 = vector.load %arg6[%c1_211, %c0_212, %c145_213] : memref<2x2x512xf32, #tpu.memory_space<vmem>>, vector<1x2x256xf32>
    %451 = vector.shape_cast %450 : vector<1x2x256xf32> to vector<2x256xf32>
    %452 = vector.broadcast %449 : f32 to vector<2x256xf32>
    %453 = arith.mulf %452, %451 : vector<2x256xf32>
    %454 = arith.addf %448, %453 : vector<2x256xf32>
    %c88 = arith.constant 88 : index
    %455 = memref.load %arg1[%c88] : memref<98xf32, #tpu.memory_space<smem>>
    %c1_214 = arith.constant 1 : index
    %c0_215 = arith.constant 0 : index
    %c161_216 = arith.constant 161 : index
    %456 = vector.load %arg6[%c1_214, %c0_215, %c161_216] : memref<2x2x512xf32, #tpu.memory_space<vmem>>, vector<1x2x256xf32>
    %457 = vector.shape_cast %456 : vector<1x2x256xf32> to vector<2x256xf32>
    %458 = vector.broadcast %455 : f32 to vector<2x256xf32>
    %459 = arith.mulf %458, %457 : vector<2x256xf32>
    %460 = arith.addf %454, %459 : vector<2x256xf32>
    %c95_217 = arith.constant 95 : index
    %461 = memref.load %arg1[%c95_217] : memref<98xf32, #tpu.memory_space<smem>>
    %c1_218 = arith.constant 1 : index
    %c0_219 = arith.constant 0 : index
    %c177_220 = arith.constant 177 : index
    %462 = vector.load %arg6[%c1_218, %c0_219, %c177_220] : memref<2x2x512xf32, #tpu.memory_space<vmem>>, vector<1x2x256xf32>
    %463 = vector.shape_cast %462 : vector<1x2x256xf32> to vector<2x256xf32>
    %464 = vector.broadcast %461 : f32 to vector<2x256xf32>
    %465 = arith.mulf %464, %463 : vector<2x256xf32>
    %466 = arith.addf %460, %465 : vector<2x256xf32>
    %c4_221 = arith.constant 4 : index
    %c0_222 = arith.constant 0 : index
    %467 = vector.load %arg4[%c4_221, %c0_222] : memref<7x256xf32, #tpu.memory_space<vmem>>, vector<1x256xf32>
    %468 = vector.broadcast %467 : vector<1x256xf32> to vector<2x256xf32>
    %469 = arith.mulf %468, %466 : vector<2x256xf32>
    %470 = arith.addf %381, %469 : vector<2x256xf32>
    %cst_223 = arith.constant 0.000000e+00 : f32
    %471 = vector.broadcast %cst_223 : f32 to vector<2x256xf32>
    %c5 = arith.constant 5 : index
    %472 = memref.load %arg1[%c5] : memref<98xf32, #tpu.memory_space<smem>>
    %c0_224 = arith.constant 0 : index
    %c0_225 = arith.constant 0 : index
    %c82 = arith.constant 82 : index
    %473 = vector.load %arg6[%c0_224, %c0_225, %c82] : memref<2x2x512xf32, #tpu.memory_space<vmem>>, vector<1x2x256xf32>
    %474 = vector.shape_cast %473 : vector<1x2x256xf32> to vector<2x256xf32>
    %475 = vector.broadcast %472 : f32 to vector<2x256xf32>
    %476 = arith.mulf %475, %474 : vector<2x256xf32>
    %477 = arith.addf %471, %476 : vector<2x256xf32>
    %c12 = arith.constant 12 : index
    %478 = memref.load %arg1[%c12] : memref<98xf32, #tpu.memory_space<smem>>
    %c0_226 = arith.constant 0 : index
    %c0_227 = arith.constant 0 : index
    %c98 = arith.constant 98 : index
    %479 = vector.load %arg6[%c0_226, %c0_227, %c98] : memref<2x2x512xf32, #tpu.memory_space<vmem>>, vector<1x2x256xf32>
    %480 = vector.shape_cast %479 : vector<1x2x256xf32> to vector<2x256xf32>
    %481 = vector.broadcast %478 : f32 to vector<2x256xf32>
    %482 = arith.mulf %481, %480 : vector<2x256xf32>
    %483 = arith.addf %477, %482 : vector<2x256xf32>
    %c19 = arith.constant 19 : index
    %484 = memref.load %arg1[%c19] : memref<98xf32, #tpu.memory_space<smem>>
    %c0_228 = arith.constant 0 : index
    %c0_229 = arith.constant 0 : index
    %c114 = arith.constant 114 : index
    %485 = vector.load %arg6[%c0_228, %c0_229, %c114] : memref<2x2x512xf32, #tpu.memory_space<vmem>>, vector<1x2x256xf32>
    %486 = vector.shape_cast %485 : vector<1x2x256xf32> to vector<2x256xf32>
    %487 = vector.broadcast %484 : f32 to vector<2x256xf32>
    %488 = arith.mulf %487, %486 : vector<2x256xf32>
    %489 = arith.addf %483, %488 : vector<2x256xf32>
    %c26 = arith.constant 26 : index
    %490 = memref.load %arg1[%c26] : memref<98xf32, #tpu.memory_space<smem>>
    %c0_230 = arith.constant 0 : index
    %c0_231 = arith.constant 0 : index
    %c130 = arith.constant 130 : index
    %491 = vector.load %arg6[%c0_230, %c0_231, %c130] : memref<2x2x512xf32, #tpu.memory_space<vmem>>, vector<1x2x256xf32>
    %492 = vector.shape_cast %491 : vector<1x2x256xf32> to vector<2x256xf32>
    %493 = vector.broadcast %490 : f32 to vector<2x256xf32>
    %494 = arith.mulf %493, %492 : vector<2x256xf32>
    %495 = arith.addf %489, %494 : vector<2x256xf32>
    %c33 = arith.constant 33 : index
    %496 = memref.load %arg1[%c33] : memref<98xf32, #tpu.memory_space<smem>>
    %c0_232 = arith.constant 0 : index
    %c0_233 = arith.constant 0 : index
    %c146 = arith.constant 146 : index
    %497 = vector.load %arg6[%c0_232, %c0_233, %c146] : memref<2x2x512xf32, #tpu.memory_space<vmem>>, vector<1x2x256xf32>
    %498 = vector.shape_cast %497 : vector<1x2x256xf32> to vector<2x256xf32>
    %499 = vector.broadcast %496 : f32 to vector<2x256xf32>
    %500 = arith.mulf %499, %498 : vector<2x256xf32>
    %501 = arith.addf %495, %500 : vector<2x256xf32>
    %c40 = arith.constant 40 : index
    %502 = memref.load %arg1[%c40] : memref<98xf32, #tpu.memory_space<smem>>
    %c0_234 = arith.constant 0 : index
    %c0_235 = arith.constant 0 : index
    %c162 = arith.constant 162 : index
    %503 = vector.load %arg6[%c0_234, %c0_235, %c162] : memref<2x2x512xf32, #tpu.memory_space<vmem>>, vector<1x2x256xf32>
    %504 = vector.shape_cast %503 : vector<1x2x256xf32> to vector<2x256xf32>
    %505 = vector.broadcast %502 : f32 to vector<2x256xf32>
    %506 = arith.mulf %505, %504 : vector<2x256xf32>
    %507 = arith.addf %501, %506 : vector<2x256xf32>
    %c47 = arith.constant 47 : index
    %508 = memref.load %arg1[%c47] : memref<98xf32, #tpu.memory_space<smem>>
    %c0_236 = arith.constant 0 : index
    %c0_237 = arith.constant 0 : index
    %c178 = arith.constant 178 : index
    %509 = vector.load %arg6[%c0_236, %c0_237, %c178] : memref<2x2x512xf32, #tpu.memory_space<vmem>>, vector<1x2x256xf32>
    %510 = vector.shape_cast %509 : vector<1x2x256xf32> to vector<2x256xf32>
    %511 = vector.broadcast %508 : f32 to vector<2x256xf32>
    %512 = arith.mulf %511, %510 : vector<2x256xf32>
    %513 = arith.addf %507, %512 : vector<2x256xf32>
    %c54 = arith.constant 54 : index
    %514 = memref.load %arg1[%c54] : memref<98xf32, #tpu.memory_space<smem>>
    %c1_238 = arith.constant 1 : index
    %c0_239 = arith.constant 0 : index
    %c82_240 = arith.constant 82 : index
    %515 = vector.load %arg6[%c1_238, %c0_239, %c82_240] : memref<2x2x512xf32, #tpu.memory_space<vmem>>, vector<1x2x256xf32>
    %516 = vector.shape_cast %515 : vector<1x2x256xf32> to vector<2x256xf32>
    %517 = vector.broadcast %514 : f32 to vector<2x256xf32>
    %518 = arith.mulf %517, %516 : vector<2x256xf32>
    %519 = arith.addf %513, %518 : vector<2x256xf32>
    %c61 = arith.constant 61 : index
    %520 = memref.load %arg1[%c61] : memref<98xf32, #tpu.memory_space<smem>>
    %c1_241 = arith.constant 1 : index
    %c0_242 = arith.constant 0 : index
    %c98_243 = arith.constant 98 : index
    %521 = vector.load %arg6[%c1_241, %c0_242, %c98_243] : memref<2x2x512xf32, #tpu.memory_space<vmem>>, vector<1x2x256xf32>
    %522 = vector.shape_cast %521 : vector<1x2x256xf32> to vector<2x256xf32>
    %523 = vector.broadcast %520 : f32 to vector<2x256xf32>
    %524 = arith.mulf %523, %522 : vector<2x256xf32>
    %525 = arith.addf %519, %524 : vector<2x256xf32>
    %c68 = arith.constant 68 : index
    %526 = memref.load %arg1[%c68] : memref<98xf32, #tpu.memory_space<smem>>
    %c1_244 = arith.constant 1 : index
    %c0_245 = arith.constant 0 : index
    %c114_246 = arith.constant 114 : index
    %527 = vector.load %arg6[%c1_244, %c0_245, %c114_246] : memref<2x2x512xf32, #tpu.memory_space<vmem>>, vector<1x2x256xf32>
    %528 = vector.shape_cast %527 : vector<1x2x256xf32> to vector<2x256xf32>
    %529 = vector.broadcast %526 : f32 to vector<2x256xf32>
    %530 = arith.mulf %529, %528 : vector<2x256xf32>
    %531 = arith.addf %525, %530 : vector<2x256xf32>
    %c75 = arith.constant 75 : index
    %532 = memref.load %arg1[%c75] : memref<98xf32, #tpu.memory_space<smem>>
    %c1_247 = arith.constant 1 : index
    %c0_248 = arith.constant 0 : index
    %c130_249 = arith.constant 130 : index
    %533 = vector.load %arg6[%c1_247, %c0_248, %c130_249] : memref<2x2x512xf32, #tpu.memory_space<vmem>>, vector<1x2x256xf32>
    %534 = vector.shape_cast %533 : vector<1x2x256xf32> to vector<2x256xf32>
    %535 = vector.broadcast %532 : f32 to vector<2x256xf32>
    %536 = arith.mulf %535, %534 : vector<2x256xf32>
    %537 = arith.addf %531, %536 : vector<2x256xf32>
    %c82_250 = arith.constant 82 : index
    %538 = memref.load %arg1[%c82_250] : memref<98xf32, #tpu.memory_space<smem>>
    %c1_251 = arith.constant 1 : index
    %c0_252 = arith.constant 0 : index
    %c146_253 = arith.constant 146 : index
    %539 = vector.load %arg6[%c1_251, %c0_252, %c146_253] : memref<2x2x512xf32, #tpu.memory_space<vmem>>, vector<1x2x256xf32>
    %540 = vector.shape_cast %539 : vector<1x2x256xf32> to vector<2x256xf32>
    %541 = vector.broadcast %538 : f32 to vector<2x256xf32>
    %542 = arith.mulf %541, %540 : vector<2x256xf32>
    %543 = arith.addf %537, %542 : vector<2x256xf32>
    %c89 = arith.constant 89 : index
    %544 = memref.load %arg1[%c89] : memref<98xf32, #tpu.memory_space<smem>>
    %c1_254 = arith.constant 1 : index
    %c0_255 = arith.constant 0 : index
    %c162_256 = arith.constant 162 : index
    %545 = vector.load %arg6[%c1_254, %c0_255, %c162_256] : memref<2x2x512xf32, #tpu.memory_space<vmem>>, vector<1x2x256xf32>
    %546 = vector.shape_cast %545 : vector<1x2x256xf32> to vector<2x256xf32>
    %547 = vector.broadcast %544 : f32 to vector<2x256xf32>
    %548 = arith.mulf %547, %546 : vector<2x256xf32>
    %549 = arith.addf %543, %548 : vector<2x256xf32>
    %c96_257 = arith.constant 96 : index
    %550 = memref.load %arg1[%c96_257] : memref<98xf32, #tpu.memory_space<smem>>
    %c1_258 = arith.constant 1 : index
    %c0_259 = arith.constant 0 : index
    %c178_260 = arith.constant 178 : index
    %551 = vector.load %arg6[%c1_258, %c0_259, %c178_260] : memref<2x2x512xf32, #tpu.memory_space<vmem>>, vector<1x2x256xf32>
    %552 = vector.shape_cast %551 : vector<1x2x256xf32> to vector<2x256xf32>
    %553 = vector.broadcast %550 : f32 to vector<2x256xf32>
    %554 = arith.mulf %553, %552 : vector<2x256xf32>
    %555 = arith.addf %549, %554 : vector<2x256xf32>
    %c5_261 = arith.constant 5 : index
    %c0_262 = arith.constant 0 : index
    %556 = vector.load %arg4[%c5_261, %c0_262] : memref<7x256xf32, #tpu.memory_space<vmem>>, vector<1x256xf32>
    %557 = vector.broadcast %556 : vector<1x256xf32> to vector<2x256xf32>
    %558 = arith.mulf %557, %555 : vector<2x256xf32>
    %559 = arith.addf %470, %558 : vector<2x256xf32>
    %cst_263 = arith.constant 0.000000e+00 : f32
    %560 = vector.broadcast %cst_263 : f32 to vector<2x256xf32>
    %c6 = arith.constant 6 : index
    %561 = memref.load %arg1[%c6] : memref<98xf32, #tpu.memory_space<smem>>
    %c0_264 = arith.constant 0 : index
    %c0_265 = arith.constant 0 : index
    %c83 = arith.constant 83 : index
    %562 = vector.load %arg6[%c0_264, %c0_265, %c83] : memref<2x2x512xf32, #tpu.memory_space<vmem>>, vector<1x2x256xf32>
    %563 = vector.shape_cast %562 : vector<1x2x256xf32> to vector<2x256xf32>
    %564 = vector.broadcast %561 : f32 to vector<2x256xf32>
    %565 = arith.mulf %564, %563 : vector<2x256xf32>
    %566 = arith.addf %560, %565 : vector<2x256xf32>
    %c13 = arith.constant 13 : index
    %567 = memref.load %arg1[%c13] : memref<98xf32, #tpu.memory_space<smem>>
    %c0_266 = arith.constant 0 : index
    %c0_267 = arith.constant 0 : index
    %c99 = arith.constant 99 : index
    %568 = vector.load %arg6[%c0_266, %c0_267, %c99] : memref<2x2x512xf32, #tpu.memory_space<vmem>>, vector<1x2x256xf32>
    %569 = vector.shape_cast %568 : vector<1x2x256xf32> to vector<2x256xf32>
    %570 = vector.broadcast %567 : f32 to vector<2x256xf32>
    %571 = arith.mulf %570, %569 : vector<2x256xf32>
    %572 = arith.addf %566, %571 : vector<2x256xf32>
    %c20 = arith.constant 20 : index
    %573 = memref.load %arg1[%c20] : memref<98xf32, #tpu.memory_space<smem>>
    %c0_268 = arith.constant 0 : index
    %c0_269 = arith.constant 0 : index
    %c115 = arith.constant 115 : index
    %574 = vector.load %arg6[%c0_268, %c0_269, %c115] : memref<2x2x512xf32, #tpu.memory_space<vmem>>, vector<1x2x256xf32>
    %575 = vector.shape_cast %574 : vector<1x2x256xf32> to vector<2x256xf32>
    %576 = vector.broadcast %573 : f32 to vector<2x256xf32>
    %577 = arith.mulf %576, %575 : vector<2x256xf32>
    %578 = arith.addf %572, %577 : vector<2x256xf32>
    %c27 = arith.constant 27 : index
    %579 = memref.load %arg1[%c27] : memref<98xf32, #tpu.memory_space<smem>>
    %c0_270 = arith.constant 0 : index
    %c0_271 = arith.constant 0 : index
    %c131 = arith.constant 131 : index
    %580 = vector.load %arg6[%c0_270, %c0_271, %c131] : memref<2x2x512xf32, #tpu.memory_space<vmem>>, vector<1x2x256xf32>
    %581 = vector.shape_cast %580 : vector<1x2x256xf32> to vector<2x256xf32>
    %582 = vector.broadcast %579 : f32 to vector<2x256xf32>
    %583 = arith.mulf %582, %581 : vector<2x256xf32>
    %584 = arith.addf %578, %583 : vector<2x256xf32>
    %c34 = arith.constant 34 : index
    %585 = memref.load %arg1[%c34] : memref<98xf32, #tpu.memory_space<smem>>
    %c0_272 = arith.constant 0 : index
    %c0_273 = arith.constant 0 : index
    %c147 = arith.constant 147 : index
    %586 = vector.load %arg6[%c0_272, %c0_273, %c147] : memref<2x2x512xf32, #tpu.memory_space<vmem>>, vector<1x2x256xf32>
    %587 = vector.shape_cast %586 : vector<1x2x256xf32> to vector<2x256xf32>
    %588 = vector.broadcast %585 : f32 to vector<2x256xf32>
    %589 = arith.mulf %588, %587 : vector<2x256xf32>
    %590 = arith.addf %584, %589 : vector<2x256xf32>
    %c41 = arith.constant 41 : index
    %591 = memref.load %arg1[%c41] : memref<98xf32, #tpu.memory_space<smem>>
    %c0_274 = arith.constant 0 : index
    %c0_275 = arith.constant 0 : index
    %c163 = arith.constant 163 : index
    %592 = vector.load %arg6[%c0_274, %c0_275, %c163] : memref<2x2x512xf32, #tpu.memory_space<vmem>>, vector<1x2x256xf32>
    %593 = vector.shape_cast %592 : vector<1x2x256xf32> to vector<2x256xf32>
    %594 = vector.broadcast %591 : f32 to vector<2x256xf32>
    %595 = arith.mulf %594, %593 : vector<2x256xf32>
    %596 = arith.addf %590, %595 : vector<2x256xf32>
    %c48 = arith.constant 48 : index
    %597 = memref.load %arg1[%c48] : memref<98xf32, #tpu.memory_space<smem>>
    %c0_276 = arith.constant 0 : index
    %c0_277 = arith.constant 0 : index
    %c179 = arith.constant 179 : index
    %598 = vector.load %arg6[%c0_276, %c0_277, %c179] : memref<2x2x512xf32, #tpu.memory_space<vmem>>, vector<1x2x256xf32>
    %599 = vector.shape_cast %598 : vector<1x2x256xf32> to vector<2x256xf32>
    %600 = vector.broadcast %597 : f32 to vector<2x256xf32>
    %601 = arith.mulf %600, %599 : vector<2x256xf32>
    %602 = arith.addf %596, %601 : vector<2x256xf32>
    %c55 = arith.constant 55 : index
    %603 = memref.load %arg1[%c55] : memref<98xf32, #tpu.memory_space<smem>>
    %c1_278 = arith.constant 1 : index
    %c0_279 = arith.constant 0 : index
    %c83_280 = arith.constant 83 : index
    %604 = vector.load %arg6[%c1_278, %c0_279, %c83_280] : memref<2x2x512xf32, #tpu.memory_space<vmem>>, vector<1x2x256xf32>
    %605 = vector.shape_cast %604 : vector<1x2x256xf32> to vector<2x256xf32>
    %606 = vector.broadcast %603 : f32 to vector<2x256xf32>
    %607 = arith.mulf %606, %605 : vector<2x256xf32>
    %608 = arith.addf %602, %607 : vector<2x256xf32>
    %c62 = arith.constant 62 : index
    %609 = memref.load %arg1[%c62] : memref<98xf32, #tpu.memory_space<smem>>
    %c1_281 = arith.constant 1 : index
    %c0_282 = arith.constant 0 : index
    %c99_283 = arith.constant 99 : index
    %610 = vector.load %arg6[%c1_281, %c0_282, %c99_283] : memref<2x2x512xf32, #tpu.memory_space<vmem>>, vector<1x2x256xf32>
    %611 = vector.shape_cast %610 : vector<1x2x256xf32> to vector<2x256xf32>
    %612 = vector.broadcast %609 : f32 to vector<2x256xf32>
    %613 = arith.mulf %612, %611 : vector<2x256xf32>
    %614 = arith.addf %608, %613 : vector<2x256xf32>
    %c69 = arith.constant 69 : index
    %615 = memref.load %arg1[%c69] : memref<98xf32, #tpu.memory_space<smem>>
    %c1_284 = arith.constant 1 : index
    %c0_285 = arith.constant 0 : index
    %c115_286 = arith.constant 115 : index
    %616 = vector.load %arg6[%c1_284, %c0_285, %c115_286] : memref<2x2x512xf32, #tpu.memory_space<vmem>>, vector<1x2x256xf32>
    %617 = vector.shape_cast %616 : vector<1x2x256xf32> to vector<2x256xf32>
    %618 = vector.broadcast %615 : f32 to vector<2x256xf32>
    %619 = arith.mulf %618, %617 : vector<2x256xf32>
    %620 = arith.addf %614, %619 : vector<2x256xf32>
    %c76 = arith.constant 76 : index
    %621 = memref.load %arg1[%c76] : memref<98xf32, #tpu.memory_space<smem>>
    %c1_287 = arith.constant 1 : index
    %c0_288 = arith.constant 0 : index
    %c131_289 = arith.constant 131 : index
    %622 = vector.load %arg6[%c1_287, %c0_288, %c131_289] : memref<2x2x512xf32, #tpu.memory_space<vmem>>, vector<1x2x256xf32>
    %623 = vector.shape_cast %622 : vector<1x2x256xf32> to vector<2x256xf32>
    %624 = vector.broadcast %621 : f32 to vector<2x256xf32>
    %625 = arith.mulf %624, %623 : vector<2x256xf32>
    %626 = arith.addf %620, %625 : vector<2x256xf32>
    %c83_290 = arith.constant 83 : index
    %627 = memref.load %arg1[%c83_290] : memref<98xf32, #tpu.memory_space<smem>>
    %c1_291 = arith.constant 1 : index
    %c0_292 = arith.constant 0 : index
    %c147_293 = arith.constant 147 : index
    %628 = vector.load %arg6[%c1_291, %c0_292, %c147_293] : memref<2x2x512xf32, #tpu.memory_space<vmem>>, vector<1x2x256xf32>
    %629 = vector.shape_cast %628 : vector<1x2x256xf32> to vector<2x256xf32>
    %630 = vector.broadcast %627 : f32 to vector<2x256xf32>
    %631 = arith.mulf %630, %629 : vector<2x256xf32>
    %632 = arith.addf %626, %631 : vector<2x256xf32>
    %c90 = arith.constant 90 : index
    %633 = memref.load %arg1[%c90] : memref<98xf32, #tpu.memory_space<smem>>
    %c1_294 = arith.constant 1 : index
    %c0_295 = arith.constant 0 : index
    %c163_296 = arith.constant 163 : index
    %634 = vector.load %arg6[%c1_294, %c0_295, %c163_296] : memref<2x2x512xf32, #tpu.memory_space<vmem>>, vector<1x2x256xf32>
    %635 = vector.shape_cast %634 : vector<1x2x256xf32> to vector<2x256xf32>
    %636 = vector.broadcast %633 : f32 to vector<2x256xf32>
    %637 = arith.mulf %636, %635 : vector<2x256xf32>
    %638 = arith.addf %632, %637 : vector<2x256xf32>
    %c97_297 = arith.constant 97 : index
    %639 = memref.load %arg1[%c97_297] : memref<98xf32, #tpu.memory_space<smem>>
    %c1_298 = arith.constant 1 : index
    %c0_299 = arith.constant 0 : index
    %c179_300 = arith.constant 179 : index
    %640 = vector.load %arg6[%c1_298, %c0_299, %c179_300] : memref<2x2x512xf32, #tpu.memory_space<vmem>>, vector<1x2x256xf32>
    %641 = vector.shape_cast %640 : vector<1x2x256xf32> to vector<2x256xf32>
    %642 = vector.broadcast %639 : f32 to vector<2x256xf32>
    %643 = arith.mulf %642, %641 : vector<2x256xf32>
    %644 = arith.addf %638, %643 : vector<2x256xf32>
    %c6_301 = arith.constant 6 : index
    %c0_302 = arith.constant 0 : index
    %645 = vector.load %arg4[%c6_301, %c0_302] : memref<7x256xf32, #tpu.memory_space<vmem>>, vector<1x256xf32>
    %646 = vector.broadcast %645 : vector<1x256xf32> to vector<2x256xf32>
    %647 = arith.mulf %646, %644 : vector<2x256xf32>
    %648 = arith.addf %559, %647 : vector<2x256xf32>
    %c0_303 = arith.constant 0 : index
    %649 = memref.load %arg2[%c0_303] : memref<2xf32, #tpu.memory_space<smem>>
    %650 = vector.broadcast %649 : f32 to vector<2x256xf32>
    %651 = arith.mulf %648, %650 : vector<2x256xf32>
    %c1_304 = arith.constant 1 : index
    %652 = memref.load %arg2[%c1_304] : memref<2xf32, #tpu.memory_space<smem>>
    %653 = vector.broadcast %652 : f32 to vector<2x256xf32>
    %654 = arith.addf %651, %653 : vector<2x256xf32>
    %655 = arith.negf %654 : vector<2x256xf32>
    %656 = math.exp %655 : vector<2x256xf32>
    %cst_305 = arith.constant 1.000000e+00 : f32
    %657 = vector.broadcast %cst_305 : f32 to vector<2x256xf32>
    %658 = arith.addf %657, %656 : vector<2x256xf32>
    %659 = arith.divf %657, %658 : vector<2x256xf32>
    %c0_306 = arith.constant 0 : index
    %c0_307 = arith.constant 0 : index
    %c0_308 = arith.constant 0 : index
    %660 = vector.load %arg5[%c0_306, %c0_307, %c0_308] : memref<2x1x256xf32, #tpu.memory_space<vmem>>, vector<2x1x256xf32>
    %661 = vector.shape_cast %660 : vector<2x1x256xf32> to vector<2x256xf32>
    %662 = vector.shape_cast %659 : vector<2x256xf32> to vector<2x1x256xf32>
    tpu.vector_store %arg5[%c0_306, %c0_307, %c0_308], %662 {strides = array<i32>} : memref<2x1x256xf32, #tpu.memory_space<vmem>>, vector<2x1x256xf32>,
    return
  }
  func.func @transform_0(%arg0: i32) -> i32 {
    %c0_i32 = arith.constant 0 : i32
    %c0_i32_0 = arith.constant 0 : i32
    return %c0_i32 : i32
  }
  func.func @transform_1(%arg0: i32) -> i32 {
    %c0_i32 = arith.constant 0 : i32
    %c0_i32_0 = arith.constant 0 : i32
    return %c0_i32 : i32
  }
  func.func @transform_2(%arg0: i32) -> (i32, i32, i32) {
    %c0_i32 = arith.constant 0 : i32
    %c0_i32_0 = arith.constant 0 : i32
    %c0_i32_1 = arith.constant 0 : i32
    return %arg0, %c0_i32, %c0_i32_0 : i32, i32, i32
  }
  func.func @transform_3(%arg0: i32) -> (i32, i32) {
    %c0_i32 = arith.constant 0 : i32
    %c0_i32_0 = arith.constant 0 : i32
    %c0_i32_1 = arith.constant 0 : i32
    return %c0_i32, %c0_i32_0 : i32, i32
  }
  func.func @transform_4(%arg0: i32) -> (i32, i32, i32) {
    %c0_i32 = arith.constant 0 : i32
    %c0_i32_0 = arith.constant 0 : i32
    %c0_i32_1 = arith.constant 0 : i32
    return %arg0, %c0_i32, %c0_i32_0 : i32, i32, i32
  }
}

</mosaic_0001>

<bundles_post_ra>
// kernel: tpu_custom_call.1
= control target key start
LH: loop header
LB: loop body
LE: loop exit
PB: predicated region body
PF: predicated region fallthrough
CT: control target
= control target key end

     0   :  { %9 = vsyncpa [#allocation6], 0  ;;  %s2346_s0 = inlined_call_operand.hbm [shape: f32[98], index: 0, kind: input, shape index: {}]   ;;  %s2347_s1 = inlined_call_operand.vmem [shape: f32[2], index: 1, kind: input, shape index: {}]   ;;  %s2348_s2 = inlined_call_operand.hbm [shape: f32[2,4,256], index: 2, kind: input, shape index: {}]   ;;  %s2349_s3 = inlined_call_operand.hbm [shape: f32[7,256], index: 3, kind: input, shape index: {}]   ;;  %s2350_s4 = inlined_call_operand.hbm [shape: f32[2,1,256], index: 4, kind: output, shape index: {}]  }
   0x1   :  { %10 = vsyncpa [#allocation7], 0 }
   0x2   :  { %11 = vsyncpa [#allocation4], 0 }
   0x3   :  { %12 = vsyncpa [#allocation11], 0 }
   0x4   :  { %13 = vsyncpa [#allocation5], 0  ;;  %s28_s17 = sshll.u32 %s2347_s1, 4  ;;  %s1576_s20 = scalar_lea.hbm %s2346_s0, 16  ;;  %s29_s17 = int_to_ptr.vmem [resolvable:$true] %s28_s17 }
   0x5   :  { %p1577_p0 = scmp.ne.s32.totalorder %s2346_s0, %s1576_s20  ;;  %p1580_p1 = scmp.lt.u32.totalorder %s1576_s20, %s2346_s0 }
   0x7   :  { %p1582_p2 = pnand %p1580_p1, %p1577_p0 }
   0x9   :  { %1585 = shalt.err (!%p1582_p2)
}
   0xa   :  { %s1674_s25 = smov [#allocation3]   ;;  %s1586_s1 = scalar_lea.vmem %s29_s17, 16 }
   0xb   :  { %21 = dma.hbm_to_smem %s2346_s0, 16, %s1674_s25, [#allocation6]  }
   0xc   :  { %p1587_p3 = scmp.ne.s32.totalorder %s29_s17, %s1586_s1  ;;  %p1591_p4 = scmp.lt.s32.totalorder %s29_s17, %s29_s17 }
   0xd   :  { %p1592_p5 = scmp.lt.s32.totalorder %s1586_s1, %s1586_s1 }
   0xf   :  { %p1593_p6 = por %p1592_p5, %p1591_p4 }
  0x11   :  { %p1594_p7 = pnand %p1593_p6, %p1587_p3 }
  0x13   :  { %1597 = shalt.err (!%p1594_p7)
}
  0x14   :  { %s1675_s28 = smov [#allocation8]   ;;  %s1676_s29 = smov [#allocation9]  }
  0x15   :  { %31 = dma.vmem_to_smem %s29_s17, 16, %s1675_s28, [#allocation7]  }
  0x16   :  { %s37_s30 = sshll.u32 %s1676_s29, 4  ;;  %s1598_s7 = scalar_lea.hbm %s2348_s2, 256  ;;  %s38_s30 = int_to_ptr.vmem [resolvable:$true] %s37_s30 }
  0x17   :  { %p1599_p8 = scmp.ne.s32.totalorder %s2348_s2, %s1598_s7  ;;  %p1602_p9 = scmp.lt.u32.totalorder %s1598_s7, %s2348_s2 }
  0x19   :  { %p1604_p10 = pnand %p1602_p9, %p1599_p8 }
  0x1b   :  { %1607 = shalt.err (!%p1604_p10)
}
  0x1c   :  { %s1608_s11 = scalar_lea.vmem %s38_s30, 256  ;;  %p1613_p12 = scmp.lt.s32.totalorder %s38_s30, %s38_s30 }
  0x1d   :  { %p1609_p11 = scmp.ne.s32.totalorder %s38_s30, %s1608_s11  ;;  %p1614_p13 = scmp.lt.s32.totalorder %s1608_s11, %s1608_s11 }
  0x1f   :  { %p1615_p0 = por %p1614_p13, %p1613_p12 }
  0x21   :  { %p1616_p1 = pnand %p1615_p0, %p1609_p11 }
  0x23   :  { %1619 = shalt.err (!%p1616_p1)
}
  0x24   :  { %s1677_s12 = smov 128   ;;  %s1678_s13 = smov 8  }
  0x25   :  { %43 = dma.hbm_to_vmem [thread:$0]  %s2348_s2, 256, %s38_s30, [#allocation4], %s1677_s12, %s1677_s12, %s1678_s13  }
  0x26   :  { %s1679_s16 = smov [#allocation10]   ;;  %s1620_s20 = scalar_lea.hbm %s2349_s3, 256 }
  0x27   :  { %s50_s17 = sshll.u32 %s1679_s16, 4  ;;  %p1621_p2 = scmp.ne.s32.totalorder %s2349_s3, %s1620_s20  ;;  %s51_s17 = int_to_ptr.vmem [resolvable:$true] %s50_s17 }
  0x28   :  { %p1624_p3 = scmp.lt.u32.totalorder %s1620_s20, %s2349_s3 }
  0x2a   :  { %p1626_p4 = pnand %p1624_p3, %p1621_p2 }
  0x2c   :  { %1629 = shalt.err (!%p1626_p4)
}
  0x2d   :  { %s1630_s25 = scalar_lea.vmem %s51_s17, 256  ;;  %p1635_p6 = scmp.lt.s32.totalorder %s51_s17, %s51_s17 }
  0x2e   :  { %p1631_p5 = scmp.ne.s32.totalorder %s51_s17, %s1630_s25  ;;  %p1636_p7 = scmp.lt.s32.totalorder %s1630_s25, %s1630_s25 }
  0x30   :  { %p1637_p8 = por %p1636_p7, %p1635_p6 }
  0x32   :  { %p1638_p9 = pnand %p1637_p8, %p1631_p5 }
  0x34   :  { %1641 = shalt.err (!%p1638_p9)
}
  0x35   :  { %53 = dma.hbm_to_vmem [thread:$0]  %s2349_s3, 256, %s51_s17, [#allocation11]  }
  0x36   :  { %1664 = dma.done.wait [#allocation6], 16  }
  0x37   :  { %1665 = vsyncadd [#allocation6], 4294967280 }
  0x38   :  { %1666 = dma.done.wait [#allocation7], 16  }
  0x39   :  { %1667 = vsyncadd [#allocation7], 4294967280 }
  0x3a   :  { %1668 = dma.done.wait [#allocation4], 256  }
  0x3b   :  { %1669 = vsyncadd [#allocation4], 4294967040 }
  0x3c   :  { %1670 = dma.done.wait [#allocation11], 256  }
  0x3d   :  { %1671 = vsyncadd [#allocation11], 4294967040 }
  0x3e   :  { %66 = sfence }
  0x3f   :  { %v67_v0 = vld [vmem:[#allocation9] ss:$4 sm:$0x3]  ;;  %v69_v1 = vld [vmem:[#allocation9 + $0x8] ss:$4 sm:$0x3] }
  0x40   :  { %v71_v2 = vld [vmem:[#allocation9 + $0x1] ss:$4 sm:$0x3]  ;;  %v73_v3 = vld [vmem:[#allocation9 + $0x9] ss:$4 sm:$0x3] }
  0x41   :  { %v74_v4 = vmax.f32 %v67_v0, %v71_v2  ;;  %v75_v5 = vmax.f32 %v69_v1, %v73_v3  ;;  %v76_v6 = vadd.f32 %v71_v2, %v67_v0  ;;  %v77_v7 = vadd.f32 %v73_v3, %v69_v1  ;;  %v79_v8 = vld [vmem:[#allocation9 + $0x2] ss:$4 sm:$0x3]  ;;  %v81_v9 = vld [vmem:[#allocation9 + $0xa] ss:$4 sm:$0x3] }
  0x42   :  { %v87_v10 = vld [vmem:[#allocation9 + $0x3] ss:$4 sm:$0x3]  ;;  %v89_v11 = vld [vmem:[#allocation9 + $0xb] ss:$4 sm:$0x3] }
  0x43   :  { %v82_v12 = vmax.f32 %v74_v4, %v79_v8  ;;  %v83_v13 = vmax.f32 %v75_v5, %v81_v9  ;;  %v84_v14 = vadd.f32 %v79_v8, %v76_v6  ;;  %v85_v15 = vadd.f32 %v81_v9, %v77_v7  ;;  %s1447_s3 = sld [smem:[#allocation3 + $0x15]]  ;;  %s1445_s27 = sld [smem:[#allocation3 + $0x7]] }
  0x44   :  { %v1680_v20 = vmov 0.0   ;;  %s1448_s1 = sld [smem:[#allocation3 + $0x1c]]  ;;  %s1446_s28 = sld [smem:[#allocation3 + $0xe]]  ;;  %vm159_vm0 = vcmask 654336   ;;  %vm137_vm1 = vcmask 916480   ;;  %vm148_vm2 = vcmask 785408  }
  0x45   :  { %v90_v16 = vmax.f32 %v82_v12, %v87_v10  ;;  %v91_v17 = vmax.f32 %v83_v13, %v89_v11  ;;  %v92_v18 = vadd.f32 %v87_v10, %v84_v14  ;;  %v93_v19 = vadd.f32 %v89_v11, %v85_v15  ;;  %96 = vst [vmem:[#allocation2] sm:$0x3] %v1680_v20  ;;  %s1460_s29 = sld [smem:[#allocation3 + $0xf]]  ;;  %s1459_s30 = sld [smem:[#allocation3 + $0x8]] }
  0x46   :  { %97 = vst [vmem:[#allocation2 + $0x8] sm:$0x3] %v1680_v20  ;;  %98 = vst [vmem:[#allocation2 + $0x6] sm:$0x3] %v1680_v20  ;;  %s1761_s5 = sld [smem:[#allocation3 + $0x16]]  ;;  %s1473_s6 = sld [smem:[#allocation3 + $0x9]] }
  0x47   :  { %99 = vst [vmem:[#allocation2 + $0xe] sm:$0x3] %v1680_v20  ;;  %v102_v21 = vcombine.low %v90_v16, %v91_v17  ;;  %v94_v22 = vmul.f32 0.25, %v92_v18  ;;  %v95_v23 = vmul.f32 0.25, %v93_v19  ;;  %s1681_s7 = smov 80   ;;  %s1682_s8 = smov 112  }
  0x48   :  { %s1487_s9 = sld [smem:[#allocation3 + $0xa]]  ;;  %s1474_s0 = sld [smem:[#allocation3 + $0x10]]  ;;  %vm171_vm3 = vcmask 523264   ;;  %vm182_vm4 = vcmask 392192   ;;  %vm193_vm5 = vcmask 261120   ;;  %vm475_vm6 = vcmask 408576  }
  0x49   :  { %1443 = vst.sshfl [vmem:[#allocation2 + $0x2] sm:$0x33 pattern:$0x75316420] %v102_v21  ;;  %v114_v24 = vcombine.low %v94_v22, %v95_v23  ;;  %v153_v25 = vstv %s1447_s3  ;;  %v131_v26 = vstv %s1445_s27  ;;  %s1683_s10 = smov 64   ;;  %s1684_s11 = smov 96  }
  0x4a   :  { %v165_v29 = vstv %s1448_s1  ;;  %v142_v30 = vstv %s1446_s28  ;;  %s1475_s12 = sld [smem:[#allocation3 + $0x17]]  ;;  %s1462_s13 = sld [smem:[#allocation3 + $0x1d]]  ;;  %vm298_vm7 = vcmask 416768   ;;  %vm652_vm8 = vcmask 400384  }
  0x4b   :  { %1444 = vst.sshfl [vmem:[#allocation2 + $0xa] sm:$0x33 pattern:$0x75316420] %v114_v24  ;;  %v323_v36 = vstv %s1460_s29  ;;  %v313_v37 = vstv %s1459_s30  ;;  %s1501_s14 = sld [smem:[#allocation3 + $0xb]]  ;;  %s1488_s15 = sld [smem:[#allocation3 + $0x11]] }
  0x4c   :  { %v333_v40 = vstv %s1761_s5  ;;  %v490_v42 = vstv %s1473_s6  ;;  %s1463_s16 = sld [smem:[#allocation3 + $0x24]]  ;;  %s1449_s17 = sld [smem:[#allocation3 + $0x23]]  ;;  %vm1007_vm9 = vcmask 384000   ;;  %vm1184_vm10 = vcmask 375808  }
  0x4d   :  { %s1489_s18 = sld [smem:[#allocation3 + $0x18]]  ;;  %s1476_s19 = sld [smem:[#allocation3 + $0x1e]]  ;;  %vm1361_vm11 = vcmask 367616  }
  0x4e   :  { %v667_v46 = vstv %s1487_s9  ;;  %v500_v47 = vstv %s1474_s0  ;;  %s1515_s20 = sld [smem:[#allocation3 + $0xc]]  ;;  %s1502_s21 = sld [smem:[#allocation3 + $0x12]] }
  0x4f   :  { %s1464_s22 = sld [smem:[#allocation3 + $0x2b]]  ;;  %s1450_s23 = sld [smem:[#allocation3 + $0x2a]] }
  0x50   :  { %v1763_v27 = vld [vmem:[#allocation2] sm:$0x3f]  ;;  %v510_v50 = vstv %s1475_s12  ;;  %v344_v52 = vstv %s1462_s13  ;;  %s1685_s24 = smov 48   ;;  %s1490_s25 = sld [smem:[#allocation3 + $0x1f]] }
  0x51   :  { %v1765_v28 = vld [vmem:[#allocation2 + $0x2] sm:$0x3f]  ;;  %v154_v31 = vmul.f32 %v153_v25, %v1763_v27  ;;  %v132_v32 = vmul.f32 %v131_v26, %v1763_v27  ;;  %v143_v34 = vmul.f32 %v142_v30, %v1763_v27  ;;  %v845_v56 = vstv %s1501_s14  ;;  %s1477_s2 = sld [smem:[#allocation3 + $0x25]]  ;;  %s1516_s26 = sld [smem:[#allocation3 + $0x13]] }
  0x52   :  { %v166_v33 = vmul.f32 %v165_v29, %v1765_v28  ;;  %v1773_v35 = vld [vmem:[#allocation2] sm:$0x3f]  ;;  %v677_v57 = vstv %s1488_s15  ;;  %v354_v60 = vstv %s1463_s16  ;;  %v176_v61 = vstv %s1449_s17  ;;  %s1503_s3 = sld [smem:[#allocation3 + $0x19]]  ;;  %s1478_s27 = sld [smem:[#allocation3 + $0x2c]] }
  0x53   :  { %156 = vrot.lane.b32.xlu1 %v154_v31, %s1681_s7  ;;  %134 = vrot.lane.b32.xlu0 %v132_v32, %s1682_s8  ;;  %v324_v38 = vmul.f32 %v323_v36, %v1773_v35  ;;  %v314_v39 = vmul.f32 %v313_v37, %v1773_v35  ;;  %v1780_v41 = vld [vmem:[#allocation2] sm:$0x3f]  ;;  %v334_v43 = vmul.f32 %v333_v40, %v1773_v35  ;;  %v688_v1 = vstv %s1489_s18  ;;  %s1529_s1 = sld [smem:[#allocation3 + $0xd]]  ;;  %s1686_s28 = smov 32  }
  0x54   :  { %v491_v44 = vmul.f32 %v490_v42, %v1780_v41  ;;  %v1786_v45 = vld [vmem:[#allocation2] sm:$0x3f]  ;;  %v501_v49 = vmul.f32 %v500_v47, %v1780_v41  ;;  %v511_v53 = vmul.f32 %v510_v50, %v1780_v41  ;;  %v177_v63 = vmul.f32 %v176_v61, %v1765_v28  ;;  %s1504_s29 = sld [smem:[#allocation3 + $0x20]]  ;;  %s1491_s30 = sld [smem:[#allocation3 + $0x26]]  ;;  %v1837_v42 = vld [vmem:[#allocation2 + $0x8] sm:$0x3f] }
  0x55   :  { %v668_v48 = vmul.f32 %v667_v46, %v1786_v45  ;;  %v343_v51 = vld [vmem:[#allocation2 + $0x2] sm:$0x3f]  ;;  %v678_v59 = vmul.f32 %v677_v57, %v1786_v45  ;;  %v521_v3 = vstv %s1476_s19  ;;  %v1022_v7 = vstv %s1515_s20  ;;  %s1530_s5 = sld [smem:[#allocation3 + $0x14]]  ;;  %s1517_s6 = sld [smem:[#allocation3 + $0x1a]] }
  0x56   :  { %v345_v54 = vmul.f32 %v344_v52, %v343_v51  ;;  %v1795_v55 = vld [vmem:[#allocation2] sm:$0x3f]  ;;  %v355_v62 = vmul.f32 %v354_v60, %v343_v51  ;;  %v855_v8 = vstv %s1502_s21  ;;  %v364_v11 = vstv %s1464_s22  ;;  %s1466_s9 = sld [smem:[#allocation3 + $0x39]]  ;;  %s1452_s0 = sld [smem:[#allocation3 + $0x38]] }
  0x57   :  { %168 = vrot.lane.b32.xlu1 %v166_v33, %s1683_s10  ;;  %145 = vrot.lane.b32.xlu0 %v143_v34, %s1684_s11  ;;  %v846_v58 = vmul.f32 %v845_v56, %v1795_v55  ;;  %v687_v0 = vld [vmem:[#allocation2 + $0x2] sm:$0xf]  ;;  %v856_v10 = vmul.f32 %v855_v8, %v1795_v55  ;;  %v187_v12 = vstv %s1450_s23  ;;  %v365_v13 = vmul.f32 %v364_v11, %v343_v51  ;;  %s1505_s12 = sld [smem:[#allocation3 + $0x27]]  ;;  %s1492_s13 = sld [smem:[#allocation3 + $0x2d]] }
  0x58   :  { %v520_v2 = vld [vmem:[#allocation2 + $0x2] sm:$0x3f]  ;;  %v689_v4 = vmul.f32 %v688_v1, %v687_v0  ;;  %v188_v14 = vmul.f32 %v187_v12, %v1765_v28  ;;  %v699_v16 = vstv %s1490_s25  ;;  %v531_v17 = vstv %s1477_s2  ;;  %s1531_s14 = sld [smem:[#allocation3 + $0x1b]]  ;;  %s1518_s15 = sld [smem:[#allocation3 + $0x21]]  ;;  %v1858_v0 = vld [vmem:[#allocation2 + $0x8] sm:$0x3f] }
  0x59   :  { %v522_v5 = vmul.f32 %v521_v3, %v520_v2  ;;  %v1806_v6 = vld [vmem:[#allocation2] sm:$0x3f]  ;;  %v532_v19 = vmul.f32 %v531_v17, %v520_v2  ;;  %v1032_v20 = vstv %s1516_s26  ;;  %v866_v22 = vstv %s1503_s3  ;;  %s1467_s16 = sld [smem:[#allocation3 + $0x40]]  ;;  %s1453_s17 = sld [smem:[#allocation3 + $0x3f]] }
  0x5a   :  { %v1023_v9 = vmul.f32 %v1022_v7, %v1806_v6  ;;  %v698_v15 = vld [vmem:[#allocation2 + $0x2] sm:$0x3f]  ;;  %v1033_v23 = vmul.f32 %v1032_v20, %v1806_v6  ;;  %v541_v25 = vstv %s1478_s27  ;;  %v1199_v28 = vstv %s1529_s1  ;;  %s1506_s18 = sld [smem:[#allocation3 + $0x2e]]  ;;  %s1480_s19 = sld [smem:[#allocation3 + $0x3a]] }
  0x5b   :  { %326 = vrot.lane.b32.xlu1 %v324_v38, %s1684_s11  ;;  %316 = vrot.lane.b32.xlu0 %v314_v39, %s1682_s8  ;;  %v700_v18 = vmul.f32 %v699_v16, %v698_v15  ;;  %v1817_v21 = vld [vmem:[#allocation2 + $0x2] sm:$0x3f]  ;;  %v542_v29 = vmul.f32 %v541_v25, %v520_v2  ;;  %v876_v31 = vstv %s1504_s29  ;;  %v709_v32 = vstv %s1491_s30  ;;  %s1532_s20 = sld [smem:[#allocation3 + $0x22]]  ;;  %s1519_s21 = sld [smem:[#allocation3 + $0x28]] }
  0x5c   :  { %v867_v24 = vmul.f32 %v866_v22, %v1817_v21  ;;  %v1823_v26 = vld [vmem:[#allocation2] sm:$0x3f]  ;;  %v877_v33 = vmul.f32 %v876_v31, %v1817_v21  ;;  %v710_v34 = vmul.f32 %v709_v32, %v698_v15  ;;  %v1209_v36 = vstv %s1530_s5  ;;  %s1468_s22 = sld [smem:[#allocation3 + $0x47]]  ;;  %s1454_s23 = sld [smem:[#allocation3 + $0x46]]  ;;  %v1882_v22 = vld [vmem:[#allocation2 + $0xa] sm:$0x3f] }
  0x5d   :  { %v1200_v30 = vmul.f32 %v1199_v28, %v1823_v26  ;;  %v1831_v37 = vld [vmem:[#allocation2 + $0x2] sm:$0x3f]  ;;  %v1043_v38 = vstv %s1517_s6  ;;  %v1210_v39 = vmul.f32 %v1209_v36, %v1823_v26  ;;  %v203_v46 = vstv %s1452_s0  ;;  %s1494_s25 = sld [smem:[#allocation3 + $0x3b]]  ;;  %s1481_s2 = sld [smem:[#allocation3 + $0x41]]  ;;  %v1894_v36 = vld [vmem:[#allocation2 + $0x8] sm:$0x3f] }
  0x5e   :  { %v1044_v40 = vmul.f32 %v1043_v38, %v1831_v37  ;;  %v719_v50 = vstv %s1492_s13  ;;  %v1053_v56 = vstv %s1518_s15  ;;  %s1533_s26 = sld [smem:[#allocation3 + $0x29]]  ;;  %s1520_s3 = sld [smem:[#allocation3 + $0x2f]] }
  0x5f   :  { %336 = vrot.lane.b32.xlu1 %v334_v43, %s1681_s7  ;;  %493 = vrot.lane.b32.xlu0 %v491_v44, %s1682_s8  ;;  %v379_v43 = vstv %s1466_s9  ;;  %v1839_v44 = vld [vmem:[#allocation2 + $0x8] sm:$0x3f]  ;;  %v720_v52 = vmul.f32 %v719_v50, %v698_v15  ;;  %v213_v60 = vstv %s1453_s17  ;;  %s1469_s27 = sld [smem:[#allocation3 + $0x4e]]  ;;  %s1455_s1 = sld [smem:[#allocation3 + $0x4d]] }
  0x60   :  { %v380_v47 = vmul.f32 %v379_v43, %v1837_v42  ;;  %v556_v1 = vstv %s1480_s19  ;;  %s1495_s29 = sld [smem:[#allocation3 + $0x42]]  ;;  %s1482_s30 = sld [smem:[#allocation3 + $0x48]]  ;;  %v1904_v50 = vld [vmem:[#allocation2 + $0xa] sm:$0x3f] }
  0x61   :  { %v557_v3 = vmul.f32 %v556_v1, %v1858_v0  ;;  %s1534_s5 = sld [smem:[#allocation3 + $0x30]]  ;;  %s1508_s6 = sld [smem:[#allocation3 + $0x3c]] }
  0x62   :  { %s1470_s9 = sld [smem:[#allocation3 + $0x55]]  ;;  %s1456_s0 = sld [smem:[#allocation3 + $0x54]] }
  0x63   :  { %670 = vrot.lane.b32.xlu1 %v668_v48, %s1682_s8  ;;  %503 = vrot.lane.b32.xlu0 %v501_v49, %s1684_s11  ;;  %v204_v48 = vmul.f32 %v203_v46, %v1839_v44  ;;  %v886_v49 = vstv %s1505_s12  ;;  %v566_v15 = vstv %s1481_s2  ;;  %s1496_s12 = sld [smem:[#allocation3 + $0x49]]  ;;  %s1483_s13 = sld [smem:[#allocation3 + $0x4f]] }
  0x64   :  { %v887_v51 = vmul.f32 %v886_v49, %v1817_v21  ;;  %v567_v17 = vmul.f32 %v566_v15, %v1858_v0  ;;  %s1509_s15 = sld [smem:[#allocation3 + $0x43]]  ;;  %s1915_s19 = sld [smem:[#allocation3 + $0x50]] }
  0x65   :  { %v234_v25 = vstv %s1455_s1  ;;  %s1457_s17 = sld [smem:[#allocation3 + $0x5b]]  ;;  %s1968_s1 = sld [smem:[#allocation3 + $0x57]] }
  0x66   :  { %v576_v31 = vstv %s1482_s30  ;;  %s1940_s2 = sld [smem:[#allocation3 + $0x3]]  ;;  %s1988_s30 = sld [smem:[#allocation3 + $0x45]] }
  0x67   :  { %513 = vrot.lane.b32.xlu1 %v511_v53, %s1681_s7  ;;  %347 = vrot.lane.b32.xlu0 %v345_v54, %s1683_s10  ;;  %v1848_v53 = vld [vmem:[#allocation2 + $0x2] sm:$0x3f]  ;;  %v1220_v54 = vstv %s1531_s14  ;;  %s1522_s14 = sld [smem:[#allocation3 + $0x3d]] }
  0x68   :  { %v1221_v57 = vmul.f32 %v1220_v54, %v1848_v53  ;;  %v244_v43 = vstv %s1456_s0  ;;  %v1913_v54 = vld [vmem:[#allocation2 + $0x8] sm:$0x3f]  ;;  %s2022_s0 = sld [smem:[#allocation3 + $0x4c]] }
  0x69   :  { %v755_v49 = vstv %s1496_s12  ;;  %s2024_s12 = sld [smem:[#allocation3 + $0x52]] }
  0x6b   :  { %848 = vrot.lane.b32.xlu1 %v846_v58, %s1682_s8  ;;  %680 = vrot.lane.b32.xlu0 %v678_v59, %s1684_s11  ;;  %v1054_v58 = vmul.f32 %v1053_v56, %v1831_v37  ;;  %v389_v59 = vstv %s1467_s16  ;;  %s1906_s16 = sld [smem:[#allocation3 + $0x5c]] }
  0x6c   :  { %v390_v61 = vmul.f32 %v389_v59, %v1837_v42 }
  0x6d   :  { %v1088_v56 = vstv %s1522_s14  ;;  %s2042_s14 = sld [smem:[#allocation3 + $0x5f]] }
  0x6f   :  { %357 = vrot.lane.b32.xlu1 %v355_v62, %s1685_s24  ;;  %179 = vrot.lane.b32.xlu0 %v177_v63, %s1685_s24  ;;  %v214_v62 = vmul.f32 %v213_v60, %v1839_v44  ;;  %v896_v63 = vstv %s1506_s18  ;;  %s1908_s18 = sld [smem:[#allocation3 + $0x1]]  ;;  %v1089_v60 = vmul.f32 %v1088_v56, %v1913_v54 }
  0x70   :  { %v897_v2 = vmul.f32 %v896_v63, %v1817_v21  ;;  %v254_v63 = vstv %s1457_s17  ;;  %s2062_s17 = sld [smem:[#allocation3 + $0x31]] }
  0x73   :  { %691 = vrot.lane.b32.xlu1 %v689_v4, %s1681_s7  ;;  %524 = vrot.lane.b32.xlu0 %v522_v5, %s1683_s10  ;;  %v1230_v4 = vstv %s1532_s20  ;;  %v1063_v5 = vstv %s1519_s21  ;;  %s1917_s20 = sld [smem:[#allocation3 + $0x56]]  ;;  %s1923_s21 = sld [smem:[#allocation3 + $0x2]] }
  0x74   :  { %v1231_v7 = vmul.f32 %v1230_v4, %v1848_v53  ;;  %v1064_v8 = vmul.f32 %v1063_v5, %v1831_v37 }
  0x77   :  { %1025 = vrot.lane.b32.xlu1 %v1023_v9, %s1682_s8  ;;  %858 = vrot.lane.b32.xlu0 %v856_v10, %s1684_s11  ;;  %v399_v9 = vstv %s1468_s22  ;;  %v223_v10 = vstv %s1454_s23  ;;  %s1930_s22 = sld [smem:[#allocation3 + $0x44]]  ;;  %s1932_s23 = sld [smem:[#allocation3 + $0x4a]] }
  0x78   :  { %v400_v11 = vmul.f32 %v399_v9, %v1837_v42  ;;  %v224_v12 = vmul.f32 %v223_v10, %v1839_v44 }
  0x79   :  { %v597_v9 = vstv %s1917_s20  ;;  %s2100_s20 = sld [smem:[#allocation3 + $0x33]] }
  0x7b   :  { %367 = vrot.lane.b32.xlu1 %v365_v13, %s1686_s28  ;;  %190 = vrot.lane.b32.xlu0 %v188_v14, %s1686_s28  ;;  %v1872_v13 = vld [vmem:[#allocation2 + $0x8] sm:$0x3f]  ;;  %v734_v14 = vstv %s1494_s25  ;;  %s1934_s25 = sld [smem:[#allocation3]] }
  0x7c   :  { %v735_v16 = vmul.f32 %v734_v14, %v1872_v13 }
  0x7f   :  { %702 = vrot.lane.b32.xlu1 %v700_v18, %s1683_s10  ;;  %534 = vrot.lane.b32.xlu0 %v532_v19, %s1685_s24  ;;  %v1240_v18 = vstv %s1533_s26  ;;  %v1073_v19 = vstv %s1520_s3  ;;  %s1947_s26 = sld [smem:[#allocation3 + $0x5d]]  ;;  %s1953_s3 = sld [smem:[#allocation3 + $0x3e]] }
  0x80   :  { %v1241_v20 = vmul.f32 %v1240_v18, %v1848_v53  ;;  %v1074_v21 = vmul.f32 %v1073_v19, %v1831_v37  ;;  %v911_v37 = vstv %s1508_s6  ;;  %v598_v18 = vmul.f32 %v597_v9, %v1904_v50  ;;  %s2006_s6 = sld [smem:[#allocation3 + $0x58]] }
  0x81   :  { %v1098_v19 = vstv %s1930_s22  ;;  %s1521_s22 = sld [smem:[#allocation3 + $0x36]] }
  0x83   :  { %1035 = vrot.lane.b32.xlu1 %v1033_v23, %s1684_s11  ;;  %869 = vrot.lane.b32.xlu0 %v867_v24, %s1681_s7  ;;  %v410_v23 = vstv %s1469_s27  ;;  %v1884_v24 = vld [vmem:[#allocation2 + $0xa] sm:$0x3f]  ;;  %s1961_s27 = sld [smem:[#allocation3 + $0x51]] }
  0x84   :  { %v411_v28 = vmul.f32 %v410_v23, %v1882_v22  ;;  %v255_v5 = vmul.f32 %v254_v63, %v1884_v24 }
  0x87   :  { %544 = vrot.lane.b32.xlu1 %v542_v29, %s1686_s28  ;;  %1202 = vrot.lane.b32.xlu0 %v1200_v30, %s1682_s8  ;;  %v235_v29 = vmul.f32 %v234_v25, %v1884_v24  ;;  %v744_v30 = vstv %s1495_s29  ;;  %s1975_s29 = sld [smem:[#allocation3 + $0x4]] }
  0x88   :  { %v745_v32 = vmul.f32 %v744_v30, %v1872_v13 }
  0x89   :  { %v942_v63 = vstv %s1961_s27  ;;  %s1693_s27 = smov 45  }
  0x8b   :  { %879 = vrot.lane.b32.xlu1 %v877_v33, %s1683_s10  ;;  %712 = vrot.lane.b32.xlu0 %v710_v34, %s1685_s24  ;;  %v577_v33 = vmul.f32 %v576_v31, %v1858_v0  ;;  %v1250_v34 = vstv %s1534_s5  ;;  %s1990_s5 = sld [smem:[#allocation3 + $0x4b]] }
  0x8c   :  { %v1251_v38 = vmul.f32 %v1250_v34, %v1848_v53 }
  0x8f   :  { %1212 = vrot.lane.b32.xlu1 %v1210_v39, %s1684_s11  ;;  %1046 = vrot.lane.b32.xlu0 %v1044_v40, %s1681_s7  ;;  %v912_v39 = vmul.f32 %v911_v37, %v1894_v36  ;;  %v420_v40 = vstv %s1470_s9  ;;  %v1099_v37 = vmul.f32 %v1098_v19, %v1913_v54  ;;  %s2008_s9 = sld [smem:[#allocation3 + $0x5e]]  ;;  %v1275_v19 = vstv %s1988_s30  ;;  %s1695_s30 = smov [#allocation12]  }
  0x90   :  { %v421_v46 = vmul.f32 %v420_v40, %v1882_v22 }
  0x93   :  { %382 = vrot.lane.b32.xlu1 %v380_v47, %s1682_s8  ;;  %206 = vrot.lane.b32.xlu0 %v204_v48, %s1682_s8  ;;  %v245_v47 = vmul.f32 %v244_v43, %v1884_v24  ;;  %v754_v48 = vld [vmem:[#allocation2 + $0xa] sm:$0xf] }
  0x97   :  { %889 = vrot.lane.b32.xlu1 %v887_v51, %s1685_s24  ;;  %722 = vrot.lane.b32.xlu0 %v720_v52, %s1686_s28  ;;  %v587_v51 = vstv %s1483_s13  ;;  %v756_v52 = vmul.f32 %v755_v49, %v754_v48  ;;  %s2040_s13 = sld [smem:[#allocation3 + $0x59]] }
  0x98   :  { %v588_v53 = vmul.f32 %v587_v51, %v1904_v50 }
  0x9b   :  { %1223 = vrot.lane.b32.xlu1 %v1221_v57, %s1681_s7  ;;  %1056 = vrot.lane.b32.xlu0 %v1054_v58, %s1683_s10  ;;  %v921_v57 = vstv %s1509_s15  ;;  %s2050_s15 = sld [smem:[#allocation3 + $0x60]] }
  0x9f   :  { %392 = vrot.lane.b32.xlu1 %v390_v61, %s1684_s11  ;;  %216 = vrot.lane.b32.xlu0 %v214_v62, %s1684_s11  ;;  %v922_v61 = vmul.f32 %v921_v57, %v1894_v36  ;;  %v430_v62 = vstv %s1906_s16  ;;  %s2052_s16 = sld [smem:[#allocation3 + $0x53]] }
  0xa0   :  { %v431_v4 = vmul.f32 %v430_v62, %v1882_v22  ;;  %v127_v22 = vstv %s1934_s25  ;;  %s1689_s25 = smov 50  }
  0xa1   :  { %v128_v48 = vmul.f32 %v127_v22, %v1763_v27  ;;  %v1109_v22 = vstv %s1990_s5  ;;  %s1428_s5 = sshll.u32 %s1695_s30, 4  ;;  %s1429_s5 = int_to_ptr.vmem [resolvable:$true] %s1428_s5 }
  0xa2   :  { %p1647_p11 = scmp.lt.s32.totalorder %s1429_s5, %s1429_s5 }
  0xa3   :  { %899 = vrot.lane.b32.xlu1 %v897_v2, %s1686_s28  ;;  %559 = vrot.lane.b32.xlu0 %v557_v3, %s1682_s8  ;;  %v309_v3 = vstv %s1908_s18  ;;  %s2069_s18 = sld [smem:[#allocation3 + $0x5a]] }
  0xa7   :  { %1233 = vrot.lane.b32.xlu1 %v1231_v7, %s1683_s10  ;;  %1066 = vrot.lane.b32.xlu0 %v1064_v8, %s1685_s24  ;;  %v1949_v7 = vld [vmem:[#allocation2 + $0xa] sm:$0x3f]  ;;  %v766_v8 = vstv %s1915_s19  ;;  %s2075_s19 = sld [smem:[#allocation3 + $0x61]] }
  0xab   :  { %402 = vrot.lane.b32.xlu1 %v400_v11, %s1681_s7  ;;  %226 = vrot.lane.b32.xlu0 %v224_v12, %s1681_s7  ;;  %v310_v11 = vmul.f32 %v309_v3, %v1773_v35 }
  0xaf   :  { %737 = vrot.lane.b32.xlu1 %v735_v16, %s1682_s8  ;;  %569 = vrot.lane.b32.xlu0 %v567_v17, %s1684_s11  ;;  %v486_v16 = vstv %s1923_s21  ;;  %v767_v17 = vmul.f32 %v766_v8, %v1949_v7  ;;  %s1507_s21 = sld [smem:[#allocation3 + $0x35]] }
  0xb0   :  { %v487_v25 = vmul.f32 %v486_v16, %v1780_v41 }
  0xb3   :  { %1243 = vrot.lane.b32.xlu1 %v1241_v20, %s1685_s24  ;;  %1076 = vrot.lane.b32.xlu0 %v1074_v21, %s1686_s28  ;;  %v1965_v20 = vld [vmem:[#allocation2 + $0xa] sm:$0x3f]  ;;  %v932_v21 = vstv %s1932_s23  ;;  %s1688_s23 = smov 51  }
  0xb4   :  { %v933_v41 = vmul.f32 %v932_v21, %v1965_v20  ;;  %v943_v16 = vmul.f32 %v942_v63, %v1965_v20  ;;  %v2019_v21 = vld [vmem:[#allocation2 + $0xa] sm:$0x3f] }
  0xb7   :  { %413 = vrot.lane.b32.xlu1 %v411_v28, %s1683_s10  ;;  %237 = vrot.lane.b32.xlu0 %v235_v29, %s1683_s10  ;;  %v663_v29 = vstv %s1940_s2  ;;  %s2224_s2 = sld [smem:[#allocation3 + $0x37]] }
  0xb8   :  { %v664_v51 = vmul.f32 %v663_v29, %v1786_v45 }
  0xbb   :  { %747 = vrot.lane.b32.xlu1 %v745_v32, %s1684_s11  ;;  %579 = vrot.lane.b32.xlu0 %v577_v33, %s1681_s7 }
  0xbf   :  { %1253 = vrot.lane.b32.xlu1 %v1251_v38, %s1686_s28  ;;  %914 = vrot.lane.b32.xlu0 %v912_v39, %s1682_s8  ;;  %v607_v38 = vstv %s1947_s26  ;;  %v1982_v39 = vld [vmem:[#allocation2 + $0x8] sm:$0x3f]  ;;  %s1690_s26 = smov 49  }
  0xc0   :  { %v608_v62 = vmul.f32 %v607_v38, %v1904_v50 }
  0xc3   :  { %423 = vrot.lane.b32.xlu1 %v421_v46, %s1685_s24  ;;  %247 = vrot.lane.b32.xlu0 %v245_v47, %s1685_s24  ;;  %v1265_v47 = vstv %s1953_s3  ;;  %s1691_s3 = smov 47  }
  0xc4   :  { %v1266_v27 = vmul.f32 %v1265_v47, %v1982_v39 }
  0xc5   :  { %v1919_v58 = vpop.permute.xlu1 %156  ;;  %v1921_v59 = vpop.permute.xlu0 %134 }
  0xc6   :  { %v136_v30 = vrot.slane %v1921_v59, 2 }
  0xc7   :  { %758 = vrot.lane.b32.xlu1 %v756_v52, %s1681_s7  ;;  %590 = vrot.lane.b32.xlu0 %v588_v53, %s1683_s10 }
  0xc8   :  { %v138_v56 = vsel %vm137_vm1, %v1921_v59, %v136_v30 }
  0xc9   :  { %v1936_v1 = vpop.permute.xlu1 %168  ;;  %v1938_v2 = vpop.permute.xlu0 %145 }
  0xca   :  { %v147_v40 = vrot.slane %v1938_v2, 2 }
  0xcb   :  { %1091 = vrot.lane.b32.xlu1 %v1089_v60, %s1682_s8  ;;  %924 = vrot.lane.b32.xlu0 %v922_v61, %s1684_s11 }
  0xcc   :  { %v149_v45 = vsel %vm148_vm2, %v1938_v2, %v147_v40  ;;  %v786_v40 = vstv %s2008_s9 }
  0xcd   :  { %v327_v10 = vpop.permute.xlu1 %326  ;;  %v317_v12 = vpop.permute.xlu0 %316 }
  0xce   :  { %v328_v14 = vrot.slane %v327_v10, 2  ;;  %v318_v15 = vrot.slane %v317_v12, 2 }
  0xcf   :  { %433 = vrot.lane.b32.xlu1 %v431_v4, %s1686_s28  ;;  %257 = vrot.lane.b32.xlu0 %v255_v5, %s1686_s28  ;;  %v776_v4 = vstv %s1968_s1  ;;  %v140_v5 = vadd.f32 %v138_v56, %v128_v48  ;;  %s2322_s1 = sld [smem:[#allocation8]] }
  0xd0   :  { %v319_v35 = vsel %vm137_vm1, %v317_v12, %v318_v15  ;;  %v329_v31 = vsel %vm148_vm2, %v327_v10, %v328_v14  ;;  %v841_v14 = vstv %s1975_s29  ;;  %s1542_s29 = sld [smem:[#allocation8 + $0x1]] }
  0xd1   :  { %v321_v23 = vadd.f32 %v319_v35, %v310_v11  ;;  %v337_v24 = vpop.permute.xlu1 %336  ;;  %v494_v28 = vpop.permute.xlu0 %493  ;;  %v158_v11 = vrot.slane %v1919_v58, 2  ;;  %v151_v15 = vadd.f32 %v149_v45, %v140_v5 }
  0xd2   :  { %v338_v32 = vrot.slane %v337_v24, 2  ;;  %v495_v33 = vrot.slane %v494_v28, 2 }
  0xd3   :  { %v331_v34 = vadd.f32 %v329_v31, %v321_v23  ;;  %769 = vrot.lane.b32.xlu1 %v767_v17, %s1683_s10  ;;  %600 = vrot.lane.b32.xlu0 %v598_v18, %s1685_s24  ;;  %v777_v17 = vmul.f32 %v776_v4, %v1949_v7  ;;  %v160_v30 = vsel %vm159_vm0, %v1919_v58, %v158_v11  ;;  %v170_v31 = vrot.slane %v1936_v1, 6 }
  0xd4   :  { %v339_v43 = vsel %vm159_vm0, %v337_v24, %v338_v32  ;;  %v496_v46 = vsel %vm137_vm1, %v494_v28, %v495_v33  ;;  %v952_v58 = vstv %s2006_s6  ;;  %v1129_v11 = vstv %s2040_s13  ;;  %s1642_s6 = scalar_lea.vmem %s1429_s5, 64 }
  0xd5   :  { %v341_v49 = vadd.f32 %v339_v43, %v331_v34  ;;  %v671_v52 = vpop.permute.xlu1 %670  ;;  %v504_v53 = vpop.permute.xlu0 %503  ;;  %v498_v61 = vadd.f32 %v496_v46, %v487_v25  ;;  %v842_v25 = vmul.f32 %v841_v14, %v1795_v55  ;;  %v162_v34 = vadd.f32 %v160_v30, %v151_v15  ;;  %p1643_p10 = scmp.ne.s32.totalorder %s1429_s5, %s1642_s6  ;;  %p1648_p12 = scmp.lt.s32.totalorder %s1642_s6, %s1642_s6 }
  0xd6   :  { %v672_v57 = vrot.slane %v671_v52, 2  ;;  %v505_v60 = vrot.slane %v504_v53, 2  ;;  %v1110_v55 = vmul.f32 %v1109_v22, %v2019_v21  ;;  %v953_v56 = vmul.f32 %v952_v58, %v1965_v20 }
  0xd7   :  { %1101 = vrot.lane.b32.xlu1 %v1099_v37, %s1684_s11  ;;  %935 = vrot.lane.b32.xlu0 %v933_v41, %s1681_s7  ;;  %v1276_v37 = vmul.f32 %v1275_v19, %v1982_v39  ;;  %v1130_v19 = vmul.f32 %v1129_v11, %v2019_v21  ;;  %p1649_p13 = por %p1648_p12, %p1647_p11 }
  0xd8   :  { %v673_v3 = vsel %vm137_vm1, %v671_v52, %v672_v57  ;;  %v506_v59 = vsel %vm148_vm2, %v504_v53, %v505_v60  ;;  %v787_v57 = vmul.f32 %v786_v40, %v1949_v7 }
  0xd9   :  { %v675_v8 = vadd.f32 %v673_v3, %v664_v51  ;;  %v508_v50 = vadd.f32 %v506_v59, %v498_v61  ;;  %v514_v9 = vpop.permute.xlu1 %513  ;;  %v348_v10 = vpop.permute.xlu0 %347  ;;  %v2056_v61 = vld [vmem:[#allocation2 + $0xa] sm:$0x3f]  ;;  %p1650_p0 = pnand %p1649_p13, %p1643_p10 }
  0xda   :  { %v515_v12 = vrot.slane %v514_v9, 2  ;;  %v349_v2 = vrot.slane %v348_v10, 6 }
  0xdb   :  { %610 = vrot.lane.b32.xlu1 %v608_v62, %s1686_s28  ;;  %1268 = vrot.lane.b32.xlu0 %v1266_v27, %s1682_s8  ;;  %s2030_s8 = sld [smem:[#allocation3 + $0x5]]  ;;  %v1286_v62 = vstv %s2022_s0  ;;  %v1119_v27 = vstv %s2024_s12 }
  0xdc   :  { %v516_v18 = vsel %vm159_vm0, %v514_v9, %v515_v12  ;;  %v350_v35 = vsel %vm171_vm3, %v349_v2, %v348_v10  ;;  %v962_v12 = vstv %s2042_s14 }
  0xdd   :  { %v518_v23 = vadd.f32 %v516_v18, %v508_v50  ;;  %v352_v24 = vadd.f32 %v350_v35, %v341_v49  ;;  %v849_v28 = vpop.permute.xlu1 %848  ;;  %v681_v29 = vpop.permute.xlu0 %680  ;;  %v172_v49 = vsel %vm171_vm3, %v170_v31, %v1936_v1  ;;  %v1120_v50 = vmul.f32 %v1119_v27, %v2019_v21 }
  0xde   :  { %v850_v32 = vrot.slane %v849_v28, 2  ;;  %v682_v33 = vrot.slane %v681_v29, 2  ;;  %v174_v53 = vadd.f32 %v172_v49, %v162_v34  ;;  %v963_v22 = vmul.f32 %v962_v12, %v1965_v20 }
  0xdf   :  { %945 = vrot.lane.b32.xlu1 %v943_v16, %s1683_s10  ;;  %779 = vrot.lane.b32.xlu0 %v777_v17, %s1685_s24 }
  0xe0   :  { %v851_v41 = vsel %vm137_vm1, %v849_v28, %v850_v32  ;;  %v683_v38 = vsel %vm148_vm2, %v681_v29, %v682_v33  ;;  %v199_v29 = vstv %s2062_s17 }
  0xe1   :  { %v853_v43 = vadd.f32 %v851_v41, %v842_v25  ;;  %v685_v46 = vadd.f32 %v683_v38, %v675_v8  ;;  %v358_v47 = vpop.permute.xlu1 %357  ;;  %v180_v48 = vpop.permute.xlu0 %179  ;;  %v1018_v5 = vstv %s2030_s8  ;;  %v1287_v8 = vmul.f32 %v1286_v62, %v2056_v61 }
  0xe2   :  { %v359_v51 = vrot.slane %v358_v47, 6  ;;  %v181_v52 = vrot.slane %v180_v48, 6  ;;  %v1019_v15 = vmul.f32 %v1018_v5, %v1806_v6  ;;  %v1296_v25 = vstv %s2052_s16 }
  0xe3   :  { %1278 = vrot.lane.b32.xlu1 %v1276_v37, %s1684_s11  ;;  %1112 = vrot.lane.b32.xlu0 %v1110_v55, %s1681_s7  ;;  %s2060_s11 = sld [smem:[#allocation3 + $0x32]]  ;;  %v1297_v20 = vmul.f32 %v1296_v25, %v2056_v61  ;;  %v1306_v41 = vstv %s2069_s18  ;;  %v200_v58 = vmul.f32 %v199_v29, %v1839_v44 }
  0xe4   :  { %v360_v60 = vsel %vm182_vm4, %v359_v51, %v358_v47  ;;  %v183_v1 = vsel %vm182_vm4, %v181_v52, %v180_v48 }
  0xe5   :  { %v362_v7 = vadd.f32 %v360_v60, %v352_v24  ;;  %v185_v63 = vadd.f32 %v183_v1, %v174_v53  ;;  %v692_v45 = vpop.permute.xlu1 %691  ;;  %v525_v3 = vpop.permute.xlu0 %524  ;;  %v1139_v24 = vstv %s2050_s15  ;;  %v1307_v53 = vmul.f32 %v1306_v41, %v2056_v61 }
  0xe6   :  { %v693_v59 = vrot.slane %v692_v45, 6  ;;  %v526_v4 = vrot.slane %v525_v3, 6  ;;  %v1140_v55 = vmul.f32 %v1139_v24, %v2019_v21 }
  0xe7   :  { %955 = vrot.lane.b32.xlu1 %v953_v56, %s1685_s24  ;;  %789 = vrot.lane.b32.xlu0 %v787_v57, %s1686_s28 }
  0xe8   :  { %v694_v9 = vsel %vm159_vm0, %v693_v59, %v692_v45  ;;  %v527_v10 = vsel %vm171_vm3, %v526_v4, %v525_v3  ;;  %v552_v4 = vstv %s2100_s20 }
  0xe9   :  { %v696_v2 = vadd.f32 %v694_v9, %v685_v46  ;;  %v529_v14 = vadd.f32 %v527_v10, %v518_v23  ;;  %v1026_v16 = vpop.permute.xlu1 %1025  ;;  %v859_v17 = vpop.permute.xlu0 %858  ;;  %v375_v6 = vstv %s2060_s11  ;;  %v1316_v46 = vstv %s2075_s19 }
  0xea   :  { %v1027_v18 = vrot.slane %v1026_v16, 2  ;;  %v860_v35 = vrot.slane %v859_v17, 2  ;;  %v376_v38 = vmul.f32 %v375_v6, %v1837_v42  ;;  %v1317_v42 = vmul.f32 %v1316_v46, %v2056_v61 }
  0xeb   :  { %1289 = vrot.lane.b32.xlu1 %v1287_v8, %s1681_s7  ;;  %1122 = vrot.lane.b32.xlu0 %v1120_v50, %s1683_s10  ;;  %s2089_s7 = sld [smem:[#allocation3 + $0x6]] }
  0xec   :  { %v1028_v28 = vsel %vm137_vm1, %v1026_v16, %v1027_v18  ;;  %v861_v23 = vsel %vm148_vm2, %v859_v17, %v860_v35 }
  0xed   :  { %v1030_v30 = vadd.f32 %v1028_v28, %v1019_v15  ;;  %v863_v31 = vadd.f32 %v861_v23, %v853_v43  ;;  %v368_v32 = vpop.permute.xlu1 %367  ;;  %v191_v33 = vpop.permute.xlu0 %190 }
  0xee   :  { %v369_v34 = vrot.slane %v368_v32, 6  ;;  %v192_v37 = vrot.slane %v191_v33, 6 }
  0xef   :  { %1132 = vrot.lane.b32.xlu1 %v1130_v19, %s1685_s24  ;;  %965 = vrot.lane.b32.xlu0 %v963_v22, %s1686_s28 }
  0xf0   :  { %v370_v40 = vsel %vm193_vm5, %v369_v34, %v368_v32  ;;  %v194_v43 = vsel %vm193_vm5, %v192_v37, %v191_v33 }
  0xf1   :  { %v372_v21 = vadd.f32 %v370_v40, %v362_v7  ;;  %v196_v47 = vadd.f32 %v194_v43, %v185_v63  ;;  %v703_v48 = vpop.permute.xlu1 %702  ;;  %v535_v49 = vpop.permute.xlu0 %534  ;;  %v1195_v3 = vstv %s2089_s7 }
  0xf2   :  { %v704_v51 = vrot.slane %v703_v48, 6  ;;  %v536_v52 = vrot.slane %v535_v49, 6  ;;  %v1196_v9 = vmul.f32 %v1195_v3, %v1823_v26 }
  0xf3   :  { %1142 = vrot.lane.b32.xlu1 %v1140_v55, %s1686_s28  ;;  %1299 = vrot.lane.b32.xlu0 %v1297_v20, %s1683_s10  ;;  %v2106_v44 = vadd.f32 %v376_v38, %v372_v21  ;;  %v2108_v56 = vadd.f32 %v200_v58, %v196_v47  ;;  %s1493_s10 = sld [smem:[#allocation3 + $0x34]] }
  0xf4   :  { %v705_v57 = vsel %vm171_vm3, %v704_v51, %v703_v48  ;;  %v537_v60 = vsel %vm182_vm4, %v536_v52, %v535_v49 }
  0xf5   :  { %v707_v1 = vadd.f32 %v705_v57, %v696_v2  ;;  %v539_v62 = vadd.f32 %v537_v60, %v529_v14  ;;  %v1036_v27 = vpop.permute.xlu1 %1035  ;;  %v870_v7 = vpop.permute.xlu0 %869  ;;  %v553_v2 = vmul.f32 %v552_v4, %v1858_v0 }
  0xf6   :  { %v1037_v63 = vrot.slane %v1036_v27, 2  ;;  %v871_v45 = vrot.slane %v870_v7, 6 }
  0xf7   :  { %1309 = vrot.lane.b32.xlu0 %v1307_v53, %s1685_s24  ;;  %1319 = vrot.lane.b32.xlu1 %v1317_v42, %s1686_s28 }
  0xf8   :  { %v1038_v61 = vsel %vm148_vm2, %v1036_v27, %v1037_v63  ;;  %v872_v59 = vsel %vm159_vm0, %v871_v45, %v870_v7  ;;  %v907_v7 = vstv %s1507_s21 }
  0xf9   :  { %v1040_v5 = vadd.f32 %v1038_v61, %v1030_v30  ;;  %v874_v8 = vadd.f32 %v872_v59, %v863_v31  ;;  %v545_v50 = vpop.permute.xlu1 %544  ;;  %v1203_v10 = vpop.permute.xlu0 %1202  ;;  %v730_v20 = vstv %s1493_s10  ;;  %v908_v61 = vmul.f32 %v907_v7, %v1894_v36 }
  0xfa   :  { %v546_v11 = vrot.slane %v545_v50, 6  ;;  %v1204_v12 = vrot.slane %v1203_v10, 2  ;;  %v731_v43 = vmul.f32 %v730_v20, %v1872_v13 }
  0xfc   :  { %v547_v14 = vsel %vm193_vm5, %v546_v11, %v545_v50  ;;  %v1205_v15 = vsel %vm137_vm1, %v1203_v10, %v1204_v12 }
  0xfd   :  { %v549_v16 = vadd.f32 %v547_v14, %v539_v62  ;;  %v1207_v17 = vadd.f32 %v1205_v15, %v1196_v9  ;;  %v880_v18 = vpop.permute.xlu1 %879  ;;  %v713_v35 = vpop.permute.xlu0 %712 }
  0xfe   :  { %v881_v19 = vrot.slane %v880_v18, 6  ;;  %v714_v22 = vrot.slane %v713_v35, 6 }
  0xff   :  { %v2122_v24 = vadd.f32 %v553_v2, %v549_v16 }
 0x100   :  { %v882_v25 = vsel %vm171_vm3, %v881_v19, %v880_v18  ;;  %v715_v26 = vsel %vm182_vm4, %v714_v22, %v713_v35  ;;  %v1084_v18 = vstv %s1521_s22 }
 0x101   :  { %v884_v28 = vadd.f32 %v882_v25, %v874_v8  ;;  %v717_v23 = vadd.f32 %v715_v26, %v707_v1  ;;  %v1213_v0 = vpop.permute.xlu1 %1212  ;;  %v1047_v6 = vpop.permute.xlu0 %1046  ;;  %v1085_v25 = vmul.f32 %v1084_v18, %v1913_v54 }
 0x102   :  { %v1214_v29 = vrot.slane %v1213_v0, 2  ;;  %v1048_v30 = vrot.slane %v1047_v6, 6 }
 0x104   :  { %v1215_v31 = vsel %vm148_vm2, %v1213_v0, %v1214_v29  ;;  %v1049_v32 = vsel %vm159_vm0, %v1048_v30, %v1047_v6 }
 0x105   :  { %v1217_v33 = vadd.f32 %v1215_v31, %v1207_v17  ;;  %v1051_v34 = vadd.f32 %v1049_v32, %v1040_v5  ;;  %v2128_v37 = vpop.permute.xlu1 %382  ;;  %v2130_v55 = vpop.permute.xlu0 %206 }
 0x106   :  { %v384_v54 = vrot.slane %v2128_v37, 2 }
 0x109   :  { %v890_v41 = vpop.permute.xlu1 %889  ;;  %v723_v38 = vpop.permute.xlu0 %722 }
 0x10a   :  { %v891_v58 = vrot.slane %v890_v41, 6  ;;  %v724_v40 = vrot.slane %v723_v38, 6 }
 0x10c   :  { %v892_v46 = vsel %vm182_vm4, %v891_v58, %v890_v41  ;;  %v725_v21 = vsel %vm193_vm5, %v724_v40, %v723_v38 }
 0x10d   :  { %v894_v47 = vadd.f32 %v892_v46, %v884_v28  ;;  %v727_v48 = vadd.f32 %v725_v21, %v717_v23  ;;  %v1224_v49 = vpop.permute.xlu1 %1223  ;;  %v1057_v51 = vpop.permute.xlu0 %1056  ;;  %v385_v21 = vsel %vm137_vm1, %v2128_v37, %v384_v54 }
 0x10e   :  { %v1225_v52 = vrot.slane %v1224_v49, 6  ;;  %v1058_v53 = vrot.slane %v1057_v51, 6  ;;  %v387_v7 = vadd.f32 %v385_v21, %v2106_v44 }
 0x10f   :  { %v2135_v42 = vadd.f32 %v731_v43, %v727_v48 }
 0x110   :  { %v1226_v57 = vsel %vm159_vm0, %v1225_v52, %v1224_v49  ;;  %v1059_v60 = vsel %vm171_vm3, %v1058_v53, %v1057_v51  ;;  %v265_v52 = vlaneseq  ;;  %v1687_v53 = vmov 1983009808  }
 0x111   :  { %v1228_v1 = vadd.f32 %v1226_v57, %v1217_v33  ;;  %v1061_v62 = vadd.f32 %v1059_v60, %v1051_v34  ;;  %v393_v13 = vpop.permute.xlu1 %392  ;;  %v217_v27 = vpop.permute.xlu0 %216  ;;  %v208_v33 = vrot.slane %v2130_v55, 2  ;;  %v278_v57 = vunpack.c.l.s4 %v1687_v53 }
 0x112   :  { %v218_v41 = vrot.slane %v217_v27, 2  ;;  %v394_v58 = vrot.slane %v393_v13, 2  ;;  %vm1419_vm12 = vcmp.lt.s32.totalorder %v265_v52, 256 }
 0x113   :  { %v209_v38 = vsel %vm137_vm1, %v2130_v55, %v208_v33 }
 0x114   :  { %v211_v51 = vadd.f32 %v209_v38, %v2108_v56  ;;  %v395_v60 = vsel %vm148_vm2, %v393_v13, %v394_v58  ;;  %v2187_v13 = vshrl.u32 %v265_v52, 7 }
 0x115   :  { %v900_v63 = vpop.permute.xlu1 %899  ;;  %v2139_v45 = vpop.permute.xlu0 %559 }
 0x116   :  { %v901_v3 = vrot.slane %v900_v63, 6 }
 0x118   :  { %v902_v59 = vsel %vm193_vm5, %v901_v3, %v900_v63 }
 0x119   :  { %v904_v4 = vadd.f32 %v902_v59, %v894_v47  ;;  %v1234_v5 = vpop.permute.xlu1 %1233  ;;  %v1067_v8 = vpop.permute.xlu0 %1066  ;;  %v219_v47 = vsel %vm148_vm2, %v217_v27, %v218_v41  ;;  %v397_v59 = vadd.f32 %v395_v60, %v387_v7 }
 0x11a   :  { %v1235_v50 = vrot.slane %v1234_v5, 6  ;;  %v1068_v9 = vrot.slane %v1067_v8, 6  ;;  %v221_v63 = vadd.f32 %v219_v47, %v211_v51 }
 0x11b   :  { %v2143_v10 = vadd.f32 %v908_v61, %v904_v4 }
 0x11c   :  { %v1236_v11 = vsel %vm171_vm3, %v1235_v50, %v1234_v5  ;;  %v1069_v12 = vsel %vm182_vm4, %v1068_v9, %v1067_v8  ;;  %v279_v5 = vunpack.c.0.s8 %v278_v57  ;;  %v561_v8 = vrot.slane %v2139_v45, 2 }
 0x11d   :  { %v2147_v2 = vadd.f32 %v1236_v11, %v1228_v1  ;;  %v1071_v14 = vadd.f32 %v1069_v12, %v1061_v62  ;;  %v403_v15 = vpop.permute.xlu1 %402  ;;  %v227_v16 = vpop.permute.xlu0 %226 }
 0x11e   :  { %v228_v40 = vrot.slane %v227_v16, 2  ;;  %v404_v48 = vrot.slane %v403_v15, 2 }
 0x120   :  { %v229_v55 = vsel %vm159_vm0, %v227_v16, %v228_v40  ;;  %v405_v27 = vsel %vm159_vm0, %v403_v15, %v404_v48 }
 0x121   :  { %v2149_v36 = vpop.permute.xlu1 %737  ;;  %v2151_v17 = vpop.permute.xlu0 %569  ;;  %v231_v4 = vadd.f32 %v229_v55, %v221_v63  ;;  %v407_v9 = vadd.f32 %v405_v27, %v397_v59 }
 0x122   :  { %v571_v15 = vrot.slane %v2151_v17, 2 }
 0x124   :  { %v572_v38 = vsel %vm148_vm2, %v2151_v17, %v571_v15 }
 0x125   :  { %v2153_v35 = vpop.permute.xlu1 %1243  ;;  %v1077_v19 = vpop.permute.xlu0 %1076 }
 0x126   :  { %v1078_v22 = vrot.slane %v1077_v19, 6 }
 0x128   :  { %v1079_v26 = vsel %vm193_vm5, %v1078_v22, %v1077_v19 }
 0x129   :  { %v1081_v28 = vadd.f32 %v1079_v26, %v1071_v14  ;;  %v414_v23 = vpop.permute.xlu1 %413  ;;  %v238_v0 = vpop.permute.xlu0 %237  ;;  %v2195_v26 = vsub.s32 %v279_v5, %v2187_v13 }
 0x12a   :  { %v239_v49 = vrot.slane %v238_v0, 6  ;;  %v415_v1 = vrot.slane %v414_v23, 6 }
 0x12b   :  { %v2157_v6 = vadd.f32 %v1085_v25, %v1081_v28  ;;  %v562_v28 = vsel %vm137_vm1, %v2139_v45, %v561_v8 }
 0x12c   :  { %v240_v56 = vsel %vm171_vm3, %v239_v49, %v238_v0  ;;  %v416_v44 = vsel %vm171_vm3, %v415_v1, %v414_v23  ;;  %v564_v40 = vadd.f32 %v562_v28, %v2122_v24 }
 0x12d   :  { %v2159_v29 = vpop.permute.xlu1 %747  ;;  %v2161_v30 = vpop.permute.xlu0 %579  ;;  %v242_v11 = vadd.f32 %v240_v56, %v231_v4  ;;  %v418_v22 = vadd.f32 %v416_v44, %v407_v9 }
 0x12e   :  { %v581_v23 = vrot.slane %v2161_v30, 2  ;;  %v574_v51 = vadd.f32 %v572_v38, %v564_v40 }
 0x130   :  { %v582_v48 = vsel %vm159_vm0, %v2161_v30, %v581_v23 }
 0x131   :  { %v2163_v31 = vpop.permute.xlu1 %1253  ;;  %v2165_v32 = vpop.permute.xlu0 %914  ;;  %v584_v55 = vadd.f32 %v582_v48, %v574_v51  ;;  %v1261_v48 = vstv %s2224_s2 }
 0x135   :  { %v424_v34 = vpop.permute.xlu1 %423  ;;  %v248_v20 = vpop.permute.xlu0 %247 }
 0x136   :  { %v249_v62 = vrot.slane %v248_v20, 6  ;;  %v425_v61 = vrot.slane %v424_v34, 6 }
 0x138   :  { %v250_v50 = vsel %vm182_vm4, %v249_v62, %v248_v20  ;;  %v426_v16 = vsel %vm182_vm4, %v425_v61, %v424_v34  ;;  %v739_v62 = vrot.slane %v2149_v36, 2  ;;  %v749_v61 = vrot.slane %v2159_v29, 2 }
 0x139   :  { %v2171_v43 = vpop.permute.xlu1 %758  ;;  %v591_v46 = vpop.permute.xlu0 %590  ;;  %v252_v25 = vadd.f32 %v250_v50, %v242_v11  ;;  %v428_v20 = vadd.f32 %v426_v16, %v418_v22  ;;  %v916_v22 = vrot.slane %v2165_v32, 2 }
 0x13a   :  { %v592_v58 = vrot.slane %v591_v46, 6  ;;  %v740_v5 = vsel %vm137_vm1, %v2149_v36, %v739_v62  ;;  %v760_v8 = vrot.slane %v2171_v43, 6  ;;  %v750_v15 = vsel %vm148_vm2, %v2159_v29, %v749_v61 }
 0x13b   :  { %v742_v36 = vadd.f32 %v740_v5, %v2135_v42  ;;  %v917_v40 = vsel %vm137_vm1, %v2165_v32, %v916_v22 }
 0x13c   :  { %v593_v17 = vsel %vm171_vm3, %v592_v58, %v591_v46 }
 0x13d   :  { %v2180_v3 = vpop.permute.xlu1 %1091  ;;  %v2182_v37 = vpop.permute.xlu0 %924  ;;  %v595_v7 = vadd.f32 %v593_v17, %v584_v55  ;;  %v752_v23 = vadd.f32 %v750_v15, %v742_v36 }
 0x141   :  { %v434_v12 = vpop.permute.xlu1 %433  ;;  %v258_v14 = vpop.permute.xlu0 %257 }
 0x142   :  { %v435_v18 = vrot.slane %v434_v12, 6  ;;  %v259_v19 = vrot.slane %v258_v14, 6 }
 0x144   :  { %v436_v0 = vsel %vm193_vm5, %v435_v18, %v434_v12  ;;  %v260_v33 = vsel %vm193_vm5, %v259_v19, %v258_v14  ;;  %v1245_v14 = vrot.slane %v2153_v35, 6 }
 0x145   :  { %v262_v54 = vadd.f32 %v260_v33, %v252_v25  ;;  %v770_v41 = vpop.permute.xlu1 %769  ;;  %v601_v34 = vpop.permute.xlu0 %600  ;;  %v438_v21 = vadd.f32 %v436_v0, %v428_v20  ;;  %v761_v25 = vsel %vm159_vm0, %v760_v8, %v2171_v43  ;;  %v926_v20 = vrot.slane %v2182_v37, 2 }
 0x146   :  { %v602_v49 = vrot.slane %v601_v34, 6  ;;  %v771_v16 = vrot.slane %v770_v41, 6  ;;  %v1246_v42 = vsel %vm182_vm4, %v1245_v14, %v2153_v35  ;;  %v763_v38 = vadd.f32 %v761_v25, %v752_v23 }
 0x147   :  { %v276_v47 = vcombine.high %v262_v54, %v262_v54  ;;  %v283_v45 = vrot.slane %v262_v54, %v2195_v26  ;;  %v460_v1 = vrot.slane %v438_v21, %v2195_v26  ;;  %v453_v63 = vcombine.high %v438_v21, %v438_v21 }
 0x148   :  { %v603_v30 = vsel %vm182_vm4, %v602_v49, %v601_v34  ;;  %v772_v54 = vsel %vm171_vm3, %v771_v16, %v770_v41  ;;  %v1255_v34 = vrot.slane %v2163_v31, 6  ;;  %v1093_v43 = vrot.slane %v2180_v3, 2 }
 0x149   :  { %v2208_v53 = vpop.permute.xlu1 %1101  ;;  %v2210_v57 = vpop.permute.xlu0 %935  ;;  %292 = vrot.lane.b32.xlu0 %v283_v45, %s1688_s23  ;;  %v291_v60 = vcombine.high %v283_v45, %v283_v45  ;;  %v290_v24 = vrot.slane %v276_v47, %v2195_v26  ;;  %v605_v46 = vadd.f32 %v603_v30, %v595_v7  ;;  %v468_v4 = vcombine.high %v460_v1, %v460_v1 }
 0x14a   :  { %v467_v12 = vrot.slane %v453_v63, %v2195_v26  ;;  %v937_v21 = vrot.slane %v2210_v57, 6  ;;  %v1248_v35 = vadd.f32 %v1246_v42, %v2147_v2  ;;  %v774_v45 = vadd.f32 %v772_v54, %v763_v38 }
 0x14b   :  { %294 = vrot.lane.b32.xlu1 %v291_v60, %s1688_s23  ;;  %v927_v51 = vsel %vm148_vm2, %v2182_v37, %v926_v20  ;;  %v1103_v60 = vrot.slane %v2208_v53, 2  ;;  %v1256_v32 = vsel %vm193_vm5, %v1255_v34, %v2163_v31  ;;  %v1094_v2 = vsel %vm137_vm1, %v2180_v3, %v1093_v43 }
 0x14c   :  { %v938_v62 = vsel %vm159_vm0, %v937_v21, %v2210_v57  ;;  %v1096_v57 = vadd.f32 %v1094_v2, %v2157_v6 }
 0x14d   :  { %v611_v27 = vpop.permute.xlu1 %610  ;;  %v2217_v56 = vpop.permute.xlu0 %1268  ;;  %296 = vrot.lane.b32.xlu0 %v290_v24, %s1688_s23  ;;  %v919_v24 = vadd.f32 %v917_v40, %v2143_v10  ;;  %v1258_v10 = vadd.f32 %v1256_v32, %v1248_v35  ;;  %v1104_v3 = vsel %vm148_vm2, %v2208_v53, %v1103_v60 }
 0x14e   :  { %v612_v59 = vrot.slane %v611_v27, 6  ;;  %v1270_v61 = vrot.slane %v2217_v56, 2  ;;  %v1106_v14 = vadd.f32 %v1104_v3, %v1096_v57 }
 0x14f   :  { %469 = vrot.lane.b32.xlu1 %v460_v1, %s1689_s25  ;;  %v929_v63 = vadd.f32 %v927_v51, %v919_v24 }
 0x150   :  { %v613_v44 = vsel %vm193_vm5, %v612_v59, %v611_v27  ;;  %v1262_v27 = vmul.f32 %v1261_v48, %v1982_v39  ;;  %v1271_v15 = vsel %vm137_vm1, %v2217_v56, %v1270_v61 }
 0x151   :  { %v615_v50 = vadd.f32 %v613_v44, %v605_v46  ;;  %v946_v9 = vpop.permute.xlu1 %945  ;;  %v780_v11 = vpop.permute.xlu0 %779  ;;  %471 = vrot.lane.b32.xlu0 %v468_v4, %s1689_s25  ;;  %v940_v8 = vadd.f32 %v938_v62, %v929_v63 }
 0x152   :  { %v781_v28 = vrot.slane %v780_v11, 6  ;;  %v947_v17 = vrot.slane %v946_v9, 6  ;;  %v1263_v25 = vadd.f32 %v1262_v27, %v1258_v10 }
 0x153   :  { %v630_v18 = vcombine.high %v615_v50, %v615_v50  ;;  %473 = vrot.lane.b32.xlu1 %v467_v12, %s1689_s25  ;;  %v637_v19 = vrot.slane %v615_v50, %v2195_v26 }
 0x154   :  { %v782_v47 = vsel %vm182_vm4, %v781_v28, %v780_v11  ;;  %v948_v4 = vsel %vm171_vm3, %v947_v17, %v946_v9  ;;  %v1273_v20 = vadd.f32 %v1271_v15, %v1263_v25  ;;  %v796_v25 = vld [vmem:[#allocation10 + $0x3] ss:$8 sm:$0x3] }
 0x155   :  { %v2235_v0 = vpop.permute.xlu1 %1278  ;;  %v1113_v33 = vpop.permute.xlu0 %1112  ;;  %646 = vrot.lane.b32.xlu0 %v637_v19, %s1690_s26  ;;  %v645_v29 = vcombine.high %v637_v19, %v637_v19  ;;  %v644_v58 = vrot.slane %v630_v18, %v2195_v26  ;;  %v784_v1 = vadd.f32 %v782_v47, %v774_v45  ;;  %v950_v53 = vadd.f32 %v948_v4, %v940_v8 }
 0x156   :  { %v1114_v30 = vrot.slane %v1113_v33, 6  ;;  %v1280_v39 = vrot.slane %v2235_v0, 2 }
 0x157   :  { %648 = vrot.lane.b32.xlu1 %v645_v29, %s1690_s26 }
 0x158   :  { %v1115_v11 = vsel %vm159_vm0, %v1114_v30, %v1113_v33  ;;  %v1281_v56 = vsel %vm148_vm2, %v2235_v0, %v1280_v39 }
 0x159   :  { %v956_v41 = vpop.permute.xlu1 %955  ;;  %v790_v49 = vpop.permute.xlu0 %789  ;;  %650 = vrot.lane.b32.xlu0 %v644_v58, %s1690_s26  ;;  %v1117_v28 = vadd.f32 %v1115_v11, %v1106_v14  ;;  %v1283_v47 = vadd.f32 %v1281_v56, %v1273_v20 }
 0x15a   :  { %v791_v55 = vrot.slane %v790_v49, 6  ;;  %v957_v7 = vrot.slane %v956_v41, 6 }
 0x15c   :  { %v792_v37 = vsel %vm193_vm5, %v791_v55, %v790_v49  ;;  %v958_v12 = vsel %vm182_vm4, %v957_v7, %v956_v41 }
 0x15d   :  { %v794_v59 = vadd.f32 %v792_v37, %v784_v1  ;;  %v1290_v31 = vpop.permute.xlu1 %1289  ;;  %v1123_v46 = vpop.permute.xlu0 %1122  ;;  %v960_v23 = vadd.f32 %v958_v12, %v950_v53  ;;  %v440_v53 = vld [vmem:[#allocation10 + $0x1] ss:$8 sm:$0x3] }
 0x15e   :  { %v1124_v5 = vrot.slane %v1123_v46, 6  ;;  %v1291_v36 = vrot.slane %v1290_v31, 6 }
 0x15f   :  { %v809_v44 = vcombine.high %v794_v59, %v794_v59  ;;  %v816_v50 = vrot.slane %v794_v59, %v2195_v26 }
 0x160   :  { %v1125_v18 = vsel %vm171_vm3, %v1124_v5, %v1123_v46  ;;  %v1292_v58 = vsel %vm159_vm0, %v1291_v36, %v1290_v31  ;;  %v617_v36 = vld [vmem:[#allocation10 + $0x2] ss:$8 sm:$0x3] }
 0x161   :  { %v1133_v16 = vpop.permute.xlu1 %1132  ;;  %v966_v9 = vpop.permute.xlu0 %965  ;;  %825 = vrot.lane.b32.xlu1 %v816_v50, %s1685_s24  ;;  %v824_v6 = vcombine.high %v816_v50, %v816_v50  ;;  %v823_v33 = vrot.slane %v809_v44, %v2195_v26  ;;  %v1127_v54 = vadd.f32 %v1125_v18, %v1117_v28  ;;  %v1294_v49 = vadd.f32 %v1292_v58, %v1283_v47  ;;  %v1149_v47 = vld [vmem:[#allocation10 + $0x5] ss:$8 sm:$0x3] }
 0x162   :  { %v1134_v19 = vrot.slane %v1133_v16, 6  ;;  %v967_v22 = vrot.slane %v966_v9, 6 }
 0x163   :  { %827 = vrot.lane.b32.xlu0 %v824_v6, %s1685_s24  ;;  %v263_v6 = vld [vmem:[#allocation10] ss:$8 sm:$0x3] }
 0x164   :  { %v1135_v29 = vsel %vm182_vm4, %v1134_v19, %v1133_v16  ;;  %v968_v42 = vsel %vm193_vm5, %v967_v22, %v966_v9  ;;  %v2294_v16 = vsub.s32 0, %v2187_v13  ;;  %v2297_v9 = vsub.s32 1, %v2187_v13 }
 0x165   :  { %v970_v34 = vadd.f32 %v968_v42, %v960_v23  ;;  %v1143_v38 = vpop.permute.xlu1 %1142  ;;  %v1300_v43 = vpop.permute.xlu0 %1299  ;;  %829 = vrot.lane.b32.xlu1 %v823_v33, %s1685_s24  ;;  %v1137_v35 = vadd.f32 %v1135_v29, %v1127_v54  ;;  %s1692_s24 = smov 46   ;;  %v972_v29 = vld [vmem:[#allocation10 + $0x4] ss:$8 sm:$0x3] }
 0x166   :  { %v1144_v40 = vrot.slane %v1143_v38, 6  ;;  %v1301_v21 = vrot.slane %v1300_v43, 6  ;;  %v445_v18 = vrot.slane %v440_v53, %v2294_v16  ;;  %v268_v28 = vrot.slane %v263_v6, %v2294_v16 }
 0x167   :  { %v985_v45 = vcombine.high %v970_v34, %v970_v34  ;;  %v992_v0 = vrot.slane %v970_v34, %v2195_v26  ;;  %v272_v23 = vrot.slane %v263_v6, %v2297_v9  ;;  %v449_v33 = vrot.slane %v440_v53, %v2297_v9 }
 0x168   :  { %v1145_v48 = vsel %vm193_vm5, %v1144_v40, %v1143_v38  ;;  %v1302_v41 = vsel %vm171_vm3, %v1301_v21, %v1300_v43  ;;  %v622_v56 = vrot.slane %v617_v36, %v2294_v16  ;;  %v626_v38 = vrot.slane %v617_v36, %v2297_v9 }
 0x169   :  { %v1147_v51 = vadd.f32 %v1145_v48, %v1137_v35  ;;  %v1310_v60 = vpop.permute.xlu0 %1309  ;;  %1001 = vrot.lane.b32.xlu0 %v992_v0, %s1691_s3  ;;  %v1320_v17 = vpop.permute.xlu1 %1319  ;;  %v1000_v55 = vcombine.high %v992_v0, %v992_v0  ;;  %v999_v2 = vrot.slane %v985_v45, %v2195_v26  ;;  %v1304_v62 = vadd.f32 %v1302_v41, %v1294_v49 }
 0x16a   :  { %v1311_v32 = vrot.slane %v1310_v60, 6  ;;  %v1321_v24 = vrot.slane %v1320_v17, 6  ;;  %v801_v58 = vrot.slane %v796_v25, %v2294_v16  ;;  %v805_v40 = vrot.slane %v796_v25, %v2297_v9 }
 0x16b   :  { %v1169_v1 = vrot.slane %v1147_v51, %v2195_v26  ;;  %1003 = vrot.lane.b32.xlu1 %v1000_v55, %s1691_s3  ;;  %v1162_v37 = vcombine.high %v1147_v51, %v1147_v51  ;;  %v977_v48 = vrot.slane %v972_v29, %v2294_v16 }
 0x16c   :  { %v1312_v30 = vsel %vm182_vm4, %v1311_v32, %v1310_v60  ;;  %v1322_v7 = vsel %vm193_vm5, %v1321_v24, %v1320_v17  ;;  %v981_v32 = vrot.slane %v972_v29, %v2297_v9  ;;  %v1154_v24 = vrot.slane %v1149_v47, %v2294_v16 }
 0x16d   :  { %v1314_v63 = vadd.f32 %v1312_v30, %v1304_v62  ;;  %1005 = vrot.lane.b32.xlu0 %v999_v2, %s1691_s3  ;;  %v1177_v27 = vcombine.high %v1169_v1, %v1169_v1  ;;  %v1176_v59 = vrot.slane %v1162_v37, %v2195_v26  ;;  %v1326_v37 = vld [vmem:[#allocation10 + $0x6] ss:$8 sm:$0x3] }
 0x16e   :  { %v1335_v53 = vrot.slane %v1326_v37, %v2297_v9 }
 0x16f   :  { %v1324_v61 = vadd.f32 %v1322_v7, %v1314_v63  ;;  %1178 = vrot.lane.b32.xlu1 %v1169_v1, %s1692_s24 }
 0x171   :  { %v1346_v31 = vrot.slane %v1324_v61, %v2195_v26  ;;  %1180 = vrot.lane.b32.xlu0 %v1177_v27, %s1692_s24  ;;  %v1339_v46 = vcombine.high %v1324_v61, %v1324_v61  ;;  %v1158_v61 = vrot.slane %v1149_v47, %v2297_v9 }
 0x173   :  { %1182 = vrot.lane.b32.xlu1 %v1176_v59, %s1692_s24  ;;  %v1354_v10 = vcombine.high %v1346_v31, %v1346_v31  ;;  %v1353_v3 = vrot.slane %v1339_v46, %v2195_v26 }
 0x175   :  { %1355 = vrot.lane.b32.xlu0 %v1346_v31, %s1693_s27 }
 0x177   :  { %1357 = vrot.lane.b32.xlu1 %v1354_v10, %s1693_s27 }
 0x179   :  { %1359 = vrot.lane.b32.xlu0 %v1353_v3, %s1693_s27 }
 0x1bb   :  { %v293_v4 = vpop.permute.xlu0 %292 }
 0x1bd   :  { %v295_v5 = vpop.permute.xlu1 %294 }
 0x1be   :  { %v299_v20 = vsel %vm298_vm7, %v293_v4, %v295_v5 }
 0x1bf   :  { %v297_v57 = vpop.permute.xlu0 %296  ;;  %v303_v41 = vmul.f32 %v299_v20, %v268_v28 }
 0x1c0   :  { %v300_v35 = vsel %vm298_vm7, %v295_v5, %v297_v57  ;;  %v1331_v5 = vrot.slane %v1326_v37, %v2294_v16 }
 0x1c1   :  { %v470_v8 = vpop.permute.xlu1 %469  ;;  %v304_v2 = vmul.f32 %v300_v35, %v272_v23 }
 0x1c3   :  { %v472_v44 = vpop.permute.xlu0 %471 }
 0x1c4   :  { %v476_v22 = vsel %vm475_vm6, %v470_v8, %v472_v44 }
 0x1c5   :  { %v474_v50 = vpop.permute.xlu1 %473  ;;  %v480_v43 = vmul.f32 %v476_v22, %v445_v18 }
 0x1c6   :  { %v477_v54 = vsel %vm475_vm6, %v472_v44, %v474_v50 }
 0x1c7   :  { %v647_v39 = vpop.permute.xlu0 %646  ;;  %v481_v49 = vmul.f32 %v477_v54, %v449_v33  ;;  %v482_v1 = vadd.f32 %v480_v43, %v303_v41  ;;  %v1375_v33 = vstv %s1542_s29 }
 0x1c9   :  { %v649_v11 = vpop.permute.xlu1 %648  ;;  %v483_v59 = vadd.f32 %v481_v49, %v304_v2 }
 0x1ca   :  { %v653_v34 = vsel %vm652_vm8, %v647_v39, %v649_v11 }
 0x1cb   :  { %v651_v12 = vpop.permute.xlu0 %650  ;;  %v657_v51 = vmul.f32 %v653_v34, %v622_v56 }
 0x1cc   :  { %v654_v45 = vsel %vm652_vm8, %v649_v11, %v651_v12 }
 0x1cd   :  { %v658_v62 = vmul.f32 %v654_v45, %v626_v38  ;;  %v659_v31 = vadd.f32 %v657_v51, %v482_v1 }
 0x1cf   :  { %v660_v57 = vadd.f32 %v658_v62, %v483_v59 }
 0x1d3   :  { %v826_v14 = vpop.permute.xlu1 %825 }
 0x1d5   :  { %v828_v15 = vpop.permute.xlu0 %827 }
 0x1d6   :  { %v831_v0 = vsel %vm182_vm4, %v826_v14, %v828_v15 }
 0x1d7   :  { %v830_v26 = vpop.permute.xlu1 %829  ;;  %v835_v30 = vmul.f32 %v831_v0, %v801_v58 }
 0x1d8   :  { %v832_v17 = vsel %vm182_vm4, %v828_v15, %v830_v26 }
 0x1d9   :  { %v836_v46 = vmul.f32 %v832_v17, %v805_v40  ;;  %v837_v8 = vadd.f32 %v835_v30, %v659_v31 }
 0x1db   :  { %v1002_v19 = vpop.permute.xlu0 %1001  ;;  %v838_v11 = vadd.f32 %v836_v46, %v660_v57 }
 0x1dd   :  { %v1004_v42 = vpop.permute.xlu1 %1003 }
 0x1de   :  { %v1008_v55 = vsel %vm1007_vm9, %v1002_v19, %v1004_v42  ;;  %v1371_v19 = vstv %s2322_s1 }
 0x1df   :  { %v1006_v21 = vpop.permute.xlu0 %1005  ;;  %v1012_v10 = vmul.f32 %v1008_v55, %v977_v48 }
 0x1e0   :  { %v1009_v63 = vsel %vm1007_vm9, %v1004_v42, %v1006_v21  ;;  %v1694_v21 = vmov 1966171168  }
 0x1e1   :  { %v1179_v60 = vpop.permute.xlu1 %1178  ;;  %v1013_v44 = vmul.f32 %v1009_v63, %v981_v32  ;;  %v1014_v12 = vadd.f32 %v1012_v10, %v837_v8  ;;  %v1394_v47 = vunpack.c.l.s4 %v1694_v21 }
 0x1e3   :  { %v1181_v7 = vpop.permute.xlu0 %1180  ;;  %v1015_v6 = vadd.f32 %v1013_v44, %v838_v11  ;;  %v1395_v35 = vunpack.c.0.s8 %v1394_v47 }
 0x1e4   :  { %v1185_v27 = vsel %vm1184_vm10, %v1179_v60, %v1181_v7 }
 0x1e5   :  { %v1183_v3 = vpop.permute.xlu1 %1182  ;;  %v1189_v50 = vmul.f32 %v1185_v27, %v1154_v24  ;;  %v1398_v0 = vsub.s32 %v1395_v35, %v2187_v13 }
 0x1e6   :  { %v1186_v4 = vsel %vm1184_vm10, %v1181_v7, %v1183_v3 }
 0x1e7   :  { %v1356_v39 = vpop.permute.xlu0 %1355  ;;  %v1190_v14 = vmul.f32 %v1186_v4, %v1158_v61  ;;  %v1191_v36 = vadd.f32 %v1189_v50, %v1014_v12 }
 0x1e9   :  { %v1358_v15 = vpop.permute.xlu1 %1357  ;;  %v1192_v25 = vadd.f32 %v1190_v14, %v1015_v6 }
 0x1ea   :  { %v1362_v26 = vsel %vm1361_vm11, %v1356_v39, %v1358_v15 }
 0x1eb   :  { %v1366_v18 = vmul.f32 %v1362_v26, %v1331_v5  ;;  %v1360_v16 = vpop.permute.xlu0 %1359 }
 0x1ec   :  { %v1363_v22 = vsel %vm1361_vm11, %v1358_v15, %v1360_v16 }
 0x1ed   :  { %v1368_v28 = vadd.f32 %v1366_v18, %v1191_v36  ;;  %v1367_v23 = vmul.f32 %v1363_v22, %v1335_v53 }
 0x1ef   :  { %v1372_v56 = vmul.f32 %v1371_v19, %v1368_v28  ;;  %v1369_v29 = vadd.f32 %v1367_v23, %v1192_v25 }
 0x1f1   :  { %v1376_v42 = vadd.f32 %v1375_v33, %v1372_v56  ;;  %v1373_v20 = vmul.f32 %v1371_v19, %v1369_v29 }
 0x1f3   :  { %v1543_v54 = vmul.f32 -1.442695, %v1376_v42  ;;  %v1377_v34 = vadd.f32 %v1375_v33, %v1373_v20 }
 0x1f5   :  { %1568 = vpow2.f32 %v1543_v54  ;;  %v1544_v9 = vmul.f32 -1.442695, %v1377_v34 }
 0x1f7   :  { %1570 = vpow2.f32 %v1544_v9 }
 0x1ff   :  { %v1569_v38 = vpop.eup %1568 }
 0x200   :  { %v1384_v43 = vadd.f32 1.0, %v1569_v38 }
 0x201   :  { %v1571_v58 = vpop.eup %1570 }
 0x202   :  { %v1385_v40 = vadd.f32 1.0, %v1571_v58  ;;  %1572 = vrcp.f32 %v1384_v43 }
 0x204   :  { %1574 = vrcp.f32 %v1385_v40 }
 0x20c   :  { %v1573_v45 = vpop.eup %1572 }
 0x20e   :  { %v1575_v48 = vpop.eup %1574 }
 0x20f   :  { %v1392_v41 = vcombine.low %v1573_v45, %v1575_v48 }
 0x211   :  { %v1399_v49 = vrot.slane %v1392_v41, %v1398_v0 }
 0x213   :  { %v1400_v51 = vcombine.high %v1399_v49, %v1399_v49  ;;  %v1407_v60 = vrot.slane %v1399_v49, %v1398_v0 }
 0x215   :  { %v1414_v17 = vrot.slane %v1400_v51, %v1398_v0  ;;  %1421 = vst.msk [vmem:[#allocation12] sm:$0x3] %vm1419_vm12, %v1407_v60 }
 0x217   :  { %1422 = vst.msk [vmem:[#allocation12 + $0x2] sm:$0x3] %vm1419_vm12, %v1414_v17 }
 0x218   :  { %1653 = shalt.err (!%p1650_p0)
}
 0x219   :  { %s1654_s12 = scalar_lea.hbm %s2350_s4, 64 }
 0x21a   :  { %p1655_p1 = scmp.ne.s32.totalorder %s2350_s4, %s1654_s12  ;;  %p1658_p2 = scmp.lt.u32.totalorder %s1654_s12, %s2350_s4 }
 0x21c   :  { %p1660_p3 = pnand %p1658_p2, %p1655_p1 }
 0x21e   :  { %1663 = shalt.err (!%p1660_p3)
}
 0x21f   :  { %s1696_s16 = smov 2  }
 0x220   :  { %1434 = dma.vmem_to_hbm [thread:$0]  %s1429_s5, 64, %s2350_s4, [#allocation5], %s1686_s28, %s1686_s28, %s1696_s16  }
 0x221   :  { %1672 = dma.done.wait [#allocation5], 64  }
 0x222   :  { %1673 = vsyncadd [#allocation5], 4294967232 }
 0x223   :  { %1438 = vsyncpa [#allocation4], 1 }
 0x224   :  { %1439 = vsyncpa [#allocation11], 1 }
 0x225   :  { %1440 = vsyncpa [#allocation5], 1 }
 0x226   :  { %1441 = vsyncpa [#allocation6], 1 }
 0x227   :  { %1442 = vsyncpa [#allocation7], 1 }

</bundles_post_ra>
